<compile_context>
chip_gen: v7x
topology: tpu7x:2x2x1
jax: 0.10.0
libtpu: 0.0.40
codegen_flags: <defaults>
</compile_context>

<pallas_src>
import jax
import jax.numpy as jnp
from jax.experimental import pallas as pl
from jax.experimental.pallas import tpu as pltpu

STATE_DIM = 24
ACTION_DIM = 2
HIDDEN_DIM = 512


def _qnet_kernel(
    s_ref, a_ref,                       # [TB, 24] bf16, [TB, 2] bf16
    w1s_ref, w1a_ref, b1_ref,           # fused heads: [24,1024], [2,1024] bf16; [1,1024] f32
    w2q1_ref, b2q1_ref,                 # [512,512] bf16, [1,512] f32
    w2q2_ref, b2q2_ref,                 # [512,512] bf16, [1,512] f32
    w3q1_ref, w3q2_ref, b3_ref,         # [512,1] bf16 x2, [1,2] f32
    out_ref,                            # [TB, 2] f32
):
    s = s_ref[...]
    a = a_ref[...]

    # Fused layer 1 for both heads: [TB, 2H], f32 accumulation on the MXU.
    h = (jnp.dot(s, w1s_ref[...], preferred_element_type=jnp.float32)
         + jnp.dot(a, w1a_ref[...], preferred_element_type=jnp.float32)
         + b1_ref[...])
    h = jnp.maximum(h, 0.0)
    h1 = h[:, :HIDDEN_DIM].astype(jnp.bfloat16)   # lane-aligned static slices
    h2 = h[:, HIDDEN_DIM:].astype(jnp.bfloat16)

    # ---- Q1 head ----
    g1 = jnp.dot(h1, w2q1_ref[...], preferred_element_type=jnp.float32) + b2q1_ref[...]
    g1 = jnp.maximum(g1, 0.0).astype(jnp.bfloat16)
    q1 = jnp.dot(g1, w3q1_ref[...], preferred_element_type=jnp.float32)

    # ---- Q2 head ----
    g2 = jnp.dot(h2, w2q2_ref[...], preferred_element_type=jnp.float32) + b2q2_ref[...]
    g2 = jnp.maximum(g2, 0.0).astype(jnp.bfloat16)
    q2 = jnp.dot(g2, w3q2_ref[...], preferred_element_type=jnp.float32)

    out_ref[...] = jnp.concatenate([q1, q2], axis=1) + b3_ref[...]


def _round_up(x, m):
    return ((x + m - 1) // m) * m


def qnetwork_forward(state, action, params, *, block_b=256):
    """Pallas forward for QNetwork. Returns (q1, q2), each [B, 1] float32."""
    B = state.shape[0]

    # Batch tiling: pad small batches to a bf16-sublane multiple (16); tile
    # large batches with TB=block_b (multiple of 256 for full MXU M on v6e/v7x).
    if B <= block_b:
        tb = _round_up(max(B, 1), 16)
        b_pad = tb
    else:
        tb = block_b
        b_pad = _round_up(B, tb)

    def pad_rows(x):
        return x if x.shape[0] == b_pad else jnp.pad(x, ((0, b_pad - x.shape[0]), (0, 0)))

    s = pad_rows(state.astype(jnp.bfloat16))
    a = pad_rows(action.astype(jnp.bfloat16))

    # Param packing: fuse layer-1 of both heads ([26, 1024]) and split its
    # state/action rows so no [B, 26] concat buffer is needed. Weights bf16,
    # biases f32.
    w1 = jnp.concatenate([params["w1_q1"], params["w1_q2"]], axis=1)        # [26, 1024]
    w1s = w1[:STATE_DIM].astype(jnp.bfloat16)                               # [24, 1024]
    w1a = w1[STATE_DIM:].astype(jnp.bfloat16)                               # [2, 1024]
    b1 = jnp.concatenate([params["b1_q1"], params["b1_q2"]], axis=1).astype(jnp.float32)
    w2q1 = params["w2_q1"].astype(jnp.bfloat16)
    b2q1 = params["b2_q1"].astype(jnp.float32)
    w2q2 = params["w2_q2"].astype(jnp.bfloat16)
    b2q2 = params["b2_q2"].astype(jnp.float32)
    w3q1 = params["w3_q1"].astype(jnp.bfloat16)
    w3q2 = params["w3_q2"].astype(jnp.bfloat16)
    b3 = jnp.concatenate([params["b3_q1"], params["b3_q2"]], axis=1).astype(jnp.float32)

    grid = (b_pad // tb,)

    def full(shape):
        # Whole-array block; constant block index so Pallas fetches it once
        # across all batch-grid steps.
        return pl.BlockSpec(shape, lambda i: (0, 0))

    out = pl.pallas_call(
        _qnet_kernel,
        out_shape=jax.ShapeDtypeStruct((b_pad, 2), jnp.float32),
        grid=grid,
        in_specs=[
            pl.BlockSpec((tb, STATE_DIM), lambda i: (i, 0)),
            pl.BlockSpec((tb, ACTION_DIM), lambda i: (i, 0)),
            full((STATE_DIM, 2 * HIDDEN_DIM)),
            full((ACTION_DIM, 2 * HIDDEN_DIM)),
            full((1, 2 * HIDDEN_DIM)),
            full((HIDDEN_DIM, HIDDEN_DIM)),
            full((1, HIDDEN_DIM)),
            full((HIDDEN_DIM, HIDDEN_DIM)),
            full((1, HIDDEN_DIM)),
            full((HIDDEN_DIM, 1)),
            full((HIDDEN_DIM, 1)),
            full((1, 2)),
        ],
        out_specs=pl.BlockSpec((tb, 2), lambda i: (i, 0)),
        compiler_params=pltpu.CompilerParams(
            dimension_semantics=("parallel",),   # shards batch tiles across v7x's 2 TCs
        ),
    )(s, a, w1s, w1a, b1, w2q1, b2q1, w2q2, b2q2, w3q1, w3q2, b3)

    q1 = out[:B, 0:1]
    q2 = out[:B, 1:2]
    return q1, q2


def _xavier_uniform(key, fan_in, fan_out, gain=1.0):
    # Matches torch.nn.init.xavier_uniform_(W, gain=1) on a [out, in] weight,
    # stored here transposed as [in, out] (same distribution / bound).
    bound = gain * jnp.sqrt(6.0 / (fan_in + fan_out))
    return jax.random.uniform(
        key, (fan_in, fan_out), minval=-bound, maxval=bound, dtype=jnp.float32
    )


def init_params(key):
    in_dim = STATE_DIM + ACTION_DIM
    keys = jax.random.split(key, 6)
    return {
        "w1_q1": _xavier_uniform(keys[0], in_dim, HIDDEN_DIM),
        "b1_q1": jnp.zeros((1, HIDDEN_DIM), jnp.float32),
        "w2_q1": _xavier_uniform(keys[1], HIDDEN_DIM, HIDDEN_DIM),
        "b2_q1": jnp.zeros((1, HIDDEN_DIM), jnp.float32),
        "w3_q1": _xavier_uniform(keys[2], HIDDEN_DIM, 1),
        "b3_q1": jnp.zeros((1, 1), jnp.float32),
        "w1_q2": _xavier_uniform(keys[3], in_dim, HIDDEN_DIM),
        "b1_q2": jnp.zeros((1, HIDDEN_DIM), jnp.float32),
        "w2_q2": _xavier_uniform(keys[4], HIDDEN_DIM, HIDDEN_DIM),
        "b2_q2": jnp.zeros((1, HIDDEN_DIM), jnp.float32),
        "w3_q2": _xavier_uniform(keys[5], HIDDEN_DIM, 1),
        "b3_q2": jnp.zeros((1, 1), jnp.float32),
    }


def _reference_forward_bf16(state, action, params):
    """Pure-JAX reference with matching precision (bf16 operands, f32 accum)."""
    def lin(h, w, b):
        return jnp.dot(h.astype(jnp.bfloat16), w.astype(jnp.bfloat16),
                       preferred_element_type=jnp.float32) + b

    x = jnp.concatenate([state, action], axis=1)
    h1 = jax.nn.relu(lin(x, params["w1_q1"], params["b1_q1"]))
    h1 = jax.nn.relu(lin(h1, params["w2_q1"], params["b2_q1"]))
    q1 = lin(h1, params["w3_q1"], params["b3_q1"])
    h2 = jax.nn.relu(lin(x, params["w1_q2"], params["b1_q2"]))
    h2 = jax.nn.relu(lin(h2, params["w2_q2"], params["b2_q2"]))
    q2 = lin(h2, params["w3_q2"], params["b3_q2"])
    return q1, q2


def _reference_forward_f32(state, action, params):
    x = jnp.concatenate([state, action], axis=1)
    h1 = jax.nn.relu(x @ params["w1_q1"] + params["b1_q1"])
    h1 = jax.nn.relu(h1 @ params["w2_q1"] + params["b2_q1"])
    q1 = h1 @ params["w3_q1"] + params["b3_q1"]
    h2 = jax.nn.relu(x @ params["w1_q2"] + params["b1_q2"])
    h2 = jax.nn.relu(h2 @ params["w2_q2"] + params["b2_q2"])
    q2 = h2 @ params["w3_q2"] + params["b3_q2"]
    return q1, q2


if __name__ == "__main__":
    key = jax.random.PRNGKey(0)
    kp, ks, ka = jax.random.split(key, 3)

    batch = 2
    params = init_params(kp)
    state = jax.random.normal(ks, (batch, STATE_DIM), dtype=jnp.float32)
    action = jnp.tanh(jax.random.normal(ka, (batch, ACTION_DIM), dtype=jnp.float32))

    q1, q2 = qnetwork_forward(state, action, params)
    q1 = jax.block_until_ready(q1)
    q2 = jax.block_until_ready(q2)

    assert q1.shape == (batch, 1) and q2.shape == (batch, 1)

    # Precision-matched reference (bf16 operands, f32 accumulation).
    r1, r2 = _reference_forward_bf16(state, action, params)
    assert jnp.allclose(q1, r1, atol=1e-2, rtol=1e-2)
    assert jnp.allclose(q2, r2, atol=1e-2, rtol=1e-2)

    # Sanity check against the full-f32 reference with a bf16-appropriate tolerance.
    f1, f2 = _reference_forward_f32(state, action, params)
    assert jnp.allclose(q1, f1, atol=5e-2, rtol=5e-2)
    assert jnp.allclose(q2, f2, atol=5e-2, rtol=5e-2)

    print("KERNEL_OK")
</pallas_src>

<mosaic_0001>
module attributes {stable_mosaic.version = 11 : i64} {
  func.func @_qnet_kernel(%arg0: i32, %arg1: memref<16x24xbf16, #tpu.memory_space<vmem>>, %arg2: memref<16x2xbf16, #tpu.memory_space<vmem>>, %arg3: memref<24x1024xbf16, #tpu.memory_space<vmem>>, %arg4: memref<2x1024xbf16, #tpu.memory_space<vmem>>, %arg5: memref<1x1024xf32, #tpu.memory_space<vmem>>, %arg6: memref<512x512xbf16, #tpu.memory_space<vmem>>, %arg7: memref<1x512xf32, #tpu.memory_space<vmem>>, %arg8: memref<512x512xbf16, #tpu.memory_space<vmem>>, %arg9: memref<1x512xf32, #tpu.memory_space<vmem>>, %arg10: memref<512x1xbf16, #tpu.memory_space<vmem>>, %arg11: memref<512x1xbf16, #tpu.memory_space<vmem>>, %arg12: memref<1x2xf32, #tpu.memory_space<vmem>>, %arg13: memref<16x2xf32, #tpu.memory_space<vmem>>) attributes {dimension_semantics = [#tpu.dimension_semantics<parallel>], iteration_bounds = array<i64: 1>, scalar_prefetch = 0 : i64, scratch_operands = 0 : i64, tpu.core_type = #tpu.core_type<tc>, window_params = [{transform_indices = @transform_0, window_bounds = array<i64: 16, 24>}, {transform_indices = @transform_1, window_bounds = array<i64: 16, 2>}, {pipeline_mode = #tpu.pipeline_mode<synchronous>, transform_indices = @transform_2, window_bounds = array<i64: 24, 1024>}, {pipeline_mode = #tpu.pipeline_mode<synchronous>, transform_indices = @transform_3, window_bounds = array<i64: 2, 1024>}, {pipeline_mode = #tpu.pipeline_mode<synchronous>, transform_indices = @transform_4, window_bounds = array<i64: 1, 1024>}, {pipeline_mode = #tpu.pipeline_mode<synchronous>, transform_indices = @transform_5, window_bounds = array<i64: 512, 512>}, {pipeline_mode = #tpu.pipeline_mode<synchronous>, transform_indices = @transform_6, window_bounds = array<i64: 1, 512>}, {pipeline_mode = #tpu.pipeline_mode<synchronous>, transform_indices = @transform_7, window_bounds = array<i64: 512, 512>}, {pipeline_mode = #tpu.pipeline_mode<synchronous>, transform_indices = @transform_8, window_bounds = array<i64: 1, 512>}, {pipeline_mode = #tpu.pipeline_mode<synchronous>, transform_indices = @transform_9, window_bounds = array<i64: 512, 1>}, {pipeline_mode = #tpu.pipeline_mode<synchronous>, transform_indices = @transform_10, window_bounds = array<i64: 512, 1>}, {pipeline_mode = #tpu.pipeline_mode<synchronous>, transform_indices = @transform_11, window_bounds = array<i64: 1, 2>}, {transform_indices = @transform_12, window_bounds = array<i64: 16, 2>}]} {
    %c0 = arith.constant 0 : index
    %c0_0 = arith.constant 0 : index
    %0 = vector.load %arg1[%c0, %c0_0] : memref<16x24xbf16, #tpu.memory_space<vmem>>, vector<16x24xbf16>
    %c0_1 = arith.constant 0 : index
    %c0_2 = arith.constant 0 : index
    %1 = vector.load %arg2[%c0_1, %c0_2] : memref<16x2xbf16, #tpu.memory_space<vmem>>, vector<16x2xbf16>
    %c0_3 = arith.constant 0 : index
    %c0_4 = arith.constant 0 : index
    %2 = vector.load %arg3[%c0_3, %c0_4] : memref<24x1024xbf16, #tpu.memory_space<vmem>>, vector<24x1024xbf16>
    %cst = arith.constant dense<0.000000e+00> : vector<16x1024xf32>
    %3 = tpu.matmul %0, %2, %cst {dimension_numbers = #tpu.dot_dimension_numbers<[1], [0], [0], [1], [0, 0, 1, 1], [], []>} : vector<16x24xbf16>, vector<24x1024xbf16>, vector<16x1024xf32> -> vector<16x1024xf32>
    %c0_5 = arith.constant 0 : index
    %c0_6 = arith.constant 0 : index
    %4 = vector.load %arg4[%c0_5, %c0_6] : memref<2x1024xbf16, #tpu.memory_space<vmem>>, vector<2x1024xbf16>
    %cst_7 = arith.constant dense<0.000000e+00> : vector<16x1024xf32>
    %5 = tpu.matmul %1, %4, %cst_7 {dimension_numbers = #tpu.dot_dimension_numbers<[1], [0], [0], [1], [0, 0, 1, 1], [], []>} : vector<16x2xbf16>, vector<2x1024xbf16>, vector<16x1024xf32> -> vector<16x1024xf32>
    %6 = arith.addf %3, %5 : vector<16x1024xf32>
    %c0_8 = arith.constant 0 : index
    %c0_9 = arith.constant 0 : index
    %7 = vector.load %arg5[%c0_8, %c0_9] : memref<1x1024xf32, #tpu.memory_space<vmem>>, vector<1x1024xf32>
    %8 = vector.broadcast %7 : vector<1x1024xf32> to vector<16x1024xf32>
    %9 = arith.addf %6, %8 : vector<16x1024xf32>
    %cst_10 = arith.constant 0.000000e+00 : f32
    %10 = vector.broadcast %cst_10 : f32 to vector<16x1024xf32>
    %11 = arith.maximumf %9, %10 : vector<16x1024xf32>
    %12 = vector.extract_strided_slice %11 {offsets = [0, 0], sizes = [16, 512], strides = [1, 1]} : vector<16x1024xf32> to vector<16x512xf32>
    %13 = arith.truncf %12 : vector<16x512xf32> to vector<16x512xbf16>
    %14 = vector.extract_strided_slice %11 {offsets = [0, 512], sizes = [16, 512], strides = [1, 1]} : vector<16x1024xf32> to vector<16x512xf32>
    %15 = arith.truncf %14 : vector<16x512xf32> to vector<16x512xbf16>
    %c0_11 = arith.constant 0 : index
    %c0_12 = arith.constant 0 : index
    %16 = vector.load %arg6[%c0_11, %c0_12] : memref<512x512xbf16, #tpu.memory_space<vmem>>, vector<512x512xbf16>
    %cst_13 = arith.constant dense<0.000000e+00> : vector<16x512xf32>
    %17 = tpu.matmul %13, %16, %cst_13 {dimension_numbers = #tpu.dot_dimension_numbers<[1], [0], [0], [1], [0, 0, 1, 1], [], []>} : vector<16x512xbf16>, vector<512x512xbf16>, vector<16x512xf32> -> vector<16x512xf32>
    %c0_14 = arith.constant 0 : index
    %c0_15 = arith.constant 0 : index
    %18 = vector.load %arg7[%c0_14, %c0_15] : memref<1x512xf32, #tpu.memory_space<vmem>>, vector<1x512xf32>
    %19 = vector.broadcast %18 : vector<1x512xf32> to vector<16x512xf32>
    %20 = arith.addf %17, %19 : vector<16x512xf32>
    %cst_16 = arith.constant 0.000000e+00 : f32
    %21 = vector.broadcast %cst_16 : f32 to vector<16x512xf32>
    %22 = arith.maximumf %20, %21 : vector<16x512xf32>
    %23 = arith.truncf %22 : vector<16x512xf32> to vector<16x512xbf16>
    %c0_17 = arith.constant 0 : index
    %c0_18 = arith.constant 0 : index
    %24 = vector.load %arg10[%c0_17, %c0_18] : memref<512x1xbf16, #tpu.memory_space<vmem>>, vector<512x1xbf16>
    %cst_19 = arith.constant dense<0.000000e+00> : vector<16x1xf32>
    %25 = tpu.matmul %23, %24, %cst_19 {dimension_numbers = #tpu.dot_dimension_numbers<[1], [0], [0], [1], [0, 0, 1, 1], [], []>} : vector<16x512xbf16>, vector<512x1xbf16>, vector<16x1xf32> -> vector<16x1xf32>
    %c0_20 = arith.constant 0 : index
    %c0_21 = arith.constant 0 : index
    %26 = vector.load %arg8[%c0_20, %c0_21] : memref<512x512xbf16, #tpu.memory_space<vmem>>, vector<512x512xbf16>
    %cst_22 = arith.constant dense<0.000000e+00> : vector<16x512xf32>
    %27 = tpu.matmul %15, %26, %cst_22 {dimension_numbers = #tpu.dot_dimension_numbers<[1], [0], [0], [1], [0, 0, 1, 1], [], []>} : vector<16x512xbf16>, vector<512x512xbf16>, vector<16x512xf32> -> vector<16x512xf32>
    %c0_23 = arith.constant 0 : index
    %c0_24 = arith.constant 0 : index
    %28 = vector.load %arg9[%c0_23, %c0_24] : memref<1x512xf32, #tpu.memory_space<vmem>>, vector<1x512xf32>
    %29 = vector.broadcast %28 : vector<1x512xf32> to vector<16x512xf32>
    %30 = arith.addf %27, %29 : vector<16x512xf32>
    %cst_25 = arith.constant 0.000000e+00 : f32
    %31 = vector.broadcast %cst_25 : f32 to vector<16x512xf32>
    %32 = arith.maximumf %30, %31 : vector<16x512xf32>
    %33 = arith.truncf %32 : vector<16x512xf32> to vector<16x512xbf16>
    %c0_26 = arith.constant 0 : index
    %c0_27 = arith.constant 0 : index
    %34 = vector.load %arg11[%c0_26, %c0_27] : memref<512x1xbf16, #tpu.memory_space<vmem>>, vector<512x1xbf16>
    %cst_28 = arith.constant dense<0.000000e+00> : vector<16x1xf32>
    %35 = tpu.matmul %33, %34, %cst_28 {dimension_numbers = #tpu.dot_dimension_numbers<[1], [0], [0], [1], [0, 0, 1, 1], [], []>} : vector<16x512xbf16>, vector<512x1xbf16>, vector<16x1xf32> -> vector<16x1xf32>
    %36 = tpu.concatenate %25, %35 in 1 : vector<16x1xf32>, vector<16x1xf32> -> vector<16x2xf32>
    %c0_29 = arith.constant 0 : index
    %c0_30 = arith.constant 0 : index
    %37 = vector.load %arg12[%c0_29, %c0_30] : memref<1x2xf32, #tpu.memory_space<vmem>>, vector<1x2xf32>
    %38 = vector.broadcast %37 : vector<1x2xf32> to vector<16x2xf32>
    %39 = arith.addf %36, %38 : vector<16x2xf32>
    %c0_31 = arith.constant 0 : index
    %c0_32 = arith.constant 0 : index
    %40 = vector.load %arg13[%c0_31, %c0_32] : memref<16x2xf32, #tpu.memory_space<vmem>>, vector<16x2xf32>
    tpu.vector_store %arg13[%c0_31, %c0_32], %39 {strides = array<i32>} : memref<16x2xf32, #tpu.memory_space<vmem>>, vector<16x2xf32>,
    return
  }
  func.func @transform_0(%arg0: i32) -> (i32, i32) {
    %c0_i32 = arith.constant 0 : i32
    %c0_i32_0 = arith.constant 0 : i32
    return %arg0, %c0_i32 : i32, i32
  }
  func.func @transform_1(%arg0: i32) -> (i32, i32) {
    %c0_i32 = arith.constant 0 : i32
    %c0_i32_0 = arith.constant 0 : i32
    return %arg0, %c0_i32 : i32, i32
  }
  func.func @transform_2(%arg0: i32) -> (i32, i32) {
    %c0_i32 = arith.constant 0 : i32
    %c0_i32_0 = arith.constant 0 : i32
    %c0_i32_1 = arith.constant 0 : i32
    return %c0_i32, %c0_i32_0 : i32, i32
  }
  func.func @transform_3(%arg0: i32) -> (i32, i32) {
    %c0_i32 = arith.constant 0 : i32
    %c0_i32_0 = arith.constant 0 : i32
    %c0_i32_1 = arith.constant 0 : i32
    return %c0_i32, %c0_i32_0 : i32, i32
  }
  func.func @transform_4(%arg0: i32) -> (i32, i32) {
    %c0_i32 = arith.constant 0 : i32
    %c0_i32_0 = arith.constant 0 : i32
    %c0_i32_1 = arith.constant 0 : i32
    return %c0_i32, %c0_i32_0 : i32, i32
  }
  func.func @transform_5(%arg0: i32) -> (i32, i32) {
    %c0_i32 = arith.constant 0 : i32
    %c0_i32_0 = arith.constant 0 : i32
    %c0_i32_1 = arith.constant 0 : i32
    return %c0_i32, %c0_i32_0 : i32, i32
  }
  func.func @transform_6(%arg0: i32) -> (i32, i32) {
    %c0_i32 = arith.constant 0 : i32
    %c0_i32_0 = arith.constant 0 : i32
    %c0_i32_1 = arith.constant 0 : i32
    return %c0_i32, %c0_i32_0 : i32, i32
  }
  func.func @transform_7(%arg0: i32) -> (i32, i32) {
    %c0_i32 = arith.constant 0 : i32
    %c0_i32_0 = arith.constant 0 : i32
    %c0_i32_1 = arith.constant 0 : i32
    return %c0_i32, %c0_i32_0 : i32, i32
  }
  func.func @transform_8(%arg0: i32) -> (i32, i32) {
    %c0_i32 = arith.constant 0 : i32
    %c0_i32_0 = arith.constant 0 : i32
    %c0_i32_1 = arith.constant 0 : i32
    return %c0_i32, %c0_i32_0 : i32, i32
  }
  func.func @transform_9(%arg0: i32) -> (i32, i32) {
    %c0_i32 = arith.constant 0 : i32
    %c0_i32_0 = arith.constant 0 : i32
    %c0_i32_1 = arith.constant 0 : i32
    return %c0_i32, %c0_i32_0 : i32, i32
  }
  func.func @transform_10(%arg0: i32) -> (i32, i32) {
    %c0_i32 = arith.constant 0 : i32
    %c0_i32_0 = arith.constant 0 : i32
    %c0_i32_1 = arith.constant 0 : i32
    return %c0_i32, %c0_i32_0 : i32, i32
  }
  func.func @transform_11(%arg0: i32) -> (i32, i32) {
    %c0_i32 = arith.constant 0 : i32
    %c0_i32_0 = arith.constant 0 : i32
    %c0_i32_1 = arith.constant 0 : i32
    return %c0_i32, %c0_i32_0 : i32, i32
  }
  func.func @transform_12(%arg0: i32) -> (i32, i32) {
    %c0_i32 = arith.constant 0 : i32
    %c0_i32_0 = arith.constant 0 : i32
    return %arg0, %c0_i32 : i32, i32
  }
}

</mosaic_0001>

<bundles_post_ra>
// kernel: tpu_custom_call.1
= control target key start
LH: loop header
LB: loop body
LE: loop exit
PB: predicated region body
PF: predicated region fallthrough
CT: control target
= control target key end

     0   :  { %17 = vsyncpa [#allocation3], 0  ;;  %s4790_s0 = inlined_call_operand.vmem [shape: bf16[16,24], index: 0, kind: input, shape index: {}]   ;;  %s4791_s1 = inlined_call_operand.vmem [shape: bf16[16,2], index: 1, kind: input, shape index: {}]   ;;  %s4792_s2 = inlined_call_operand.vmem [shape: bf16[24,1024], index: 2, kind: input, shape index: {}]   ;;  %s4793_s3 = inlined_call_operand.vmem [shape: bf16[2,1024], index: 3, kind: input, shape index: {}]   ;;  %s4794_s4 = inlined_call_operand.vmem [shape: f32[1,1024], index: 4, kind: input, shape index: {}]   ;;  %s4795_s5 = inlined_call_operand.hbm [shape: bf16[512,512], index: 5, kind: input, shape index: {}]   ;;  %s4796_s6 = inlined_call_operand.vmem [shape: f32[1,512], index: 6, kind: input, shape index: {}]   ;;  %s4797_s7 = inlined_call_operand.hbm [shape: bf16[512,512], index: 7, kind: input, shape index: {}]   ;;  %s4798_s8 = inlined_call_operand.vmem [shape: f32[1,512], index: 8, kind: input, shape index: {}]   ;;  %s4799_s9 = inlined_call_operand.vmem [shape: bf16[512,1], index: 9, kind: input, shape index: {}]   ;;  %s4800_s10 = inlined_call_operand.vmem [shape: bf16[512,1], index: 10, kind: input, shape index: {}]   ;;  %s4801_s11 = inlined_call_operand.vmem [shape: f32[1,2], index: 11, kind: input, shape index: {}]   ;;  %s4802_s12 = inlined_call_operand.vmem [shape: f32[16,2], index: 12, kind: output, shape index: {}]  }
   0x1   :  { %18 = vsyncpa [#allocation5], 0  ;;  %s4348_s21 = smov [#allocation2]   ;;  %s4300_s25 = scalar_lea.hbm %s4795_s5, 16384 }
   0x2   :  { %s34_s22 = sshll.u32 %s4348_s21, 4  ;;  %p4301_p0 = scmp.ne.s32.totalorder %s4795_s5, %s4300_s25  ;;  %s35_s22 = int_to_ptr.vmem [resolvable:$true] %s34_s22 }
   0x3   :  { %p4304_p1 = scmp.lt.u32.totalorder %s4300_s25, %s4795_s5 }
   0x5   :  { %p4306_p2 = pnand %p4304_p1, %p4301_p0 }
   0x7   :  { %4309 = shalt.err (!%p4306_p2)
}
   0x8   :  { %s4310_s30 = scalar_lea.vmem %s35_s22, 16384  ;;  %p4315_p4 = scmp.lt.s32.totalorder %s35_s22, %s35_s22 }
   0x9   :  { %p4311_p3 = scmp.ne.s32.totalorder %s35_s22, %s4310_s30  ;;  %p4316_p5 = scmp.lt.s32.totalorder %s4310_s30, %s4310_s30 }
   0xb   :  { %p4317_p6 = por %p4316_p5, %p4315_p4 }
   0xd   :  { %p4318_p7 = pnand %p4317_p6, %p4311_p3 }
   0xf   :  { %4321 = shalt.err (!%p4318_p7)
}
  0x10   :  { %s4349_s13 = smov 256   ;;  %s4350_s14 = smov 16  }
  0x11   :  { %40 = dma.hbm_to_vmem [thread:$0]  %s4795_s5, 16384, %s35_s22, [#allocation3], %s4349_s13, %s4349_s13, %s4350_s14  }
  0x12   :  { %s4351_s17 = smov [#allocation4]   ;;  %s4322_s21 = scalar_lea.hbm %s4797_s7, 16384 }
  0x13   :  { %s48_s18 = sshll.u32 %s4351_s17, 4  ;;  %p4323_p8 = scmp.ne.s32.totalorder %s4797_s7, %s4322_s21  ;;  %s49_s18 = int_to_ptr.vmem [resolvable:$true] %s48_s18 }
  0x14   :  { %p4326_p9 = scmp.lt.u32.totalorder %s4322_s21, %s4797_s7 }
  0x16   :  { %p4328_p10 = pnand %p4326_p9, %p4323_p8 }
  0x18   :  { %4331 = shalt.err (!%p4328_p10)
}
  0x19   :  { %s4332_s27 = scalar_lea.vmem %s49_s18, 16384  ;;  %p4337_p12 = scmp.lt.s32.totalorder %s49_s18, %s49_s18 }
  0x1a   :  { %p4333_p11 = scmp.ne.s32.totalorder %s49_s18, %s4332_s27  ;;  %p4338_p13 = scmp.lt.s32.totalorder %s4332_s27, %s4332_s27 }
  0x1c   :  { %p4339_p0 = por %p4338_p13, %p4337_p12 }
  0x1e   :  { %p4340_p1 = pnand %p4339_p0, %p4333_p11 }
  0x20   :  { %4343 = shalt.err (!%p4340_p1)
}
  0x21   :  { %54 = dma.hbm_to_vmem [thread:$0]  %s4797_s7, 16384, %s49_s18, [#allocation5], %s4349_s13, %s4349_s13, %s4350_s14  }
  0x22   :  { %4344 = dma.done.wait [#allocation3], 16384  }
  0x23   :  { %4345 = vsyncadd [#allocation3], 4294950912 }
  0x24   :  { %4346 = dma.done.wait [#allocation5], 16384  }
  0x25   :  { %4347 = vsyncadd [#allocation5], 4294950912  ;;  %v97_v0 = vlaneseq  ;;  %v4352_v1 = vmov 1966171168   ;;  %v4353_v3 = vmov 0   ;;  %v86_v7 = vld [vmem:[%s4793_s3] sm:$0xff] }
  0x26   :  { %v95_v2 = vunpack.c.l.s4 %v4352_v1  ;;  %203 = vmatprep.mubr.bf16.mxu0 %v4353_v3  ;;  %246 = vmatprep.mubr.bf16.mxu1 %v4353_v3  ;;  %v93_v8 = vcombine.high %v86_v7, %v86_v7  ;;  %vm146_vm0 = vcmask 1040384   ;;  %v74_v17 = vld [vmem:[%s4792_s2] sm:$0xff]  ;;  %v75_v24 = vld [vmem:[%s4792_s2 + $0x8] sm:$0xff]  ;;  %vm142_vm1 = vcmask 15360   ;;  %v76_v37 = vld [vmem:[%s4792_s2 + $0x10] sm:$0xff] }
  0x27   :  { %v4446_v4 = vshrl.u32 %v97_v0, 7  ;;  %v78_v18 = vld [vmem:[%s4792_s2 + $0x20] sm:$0xff]  ;;  %v79_v26 = vld [vmem:[%s4792_s2 + $0x28] sm:$0xff]  ;;  %vm412_vm2 = vcmask 1043456   ;;  %v80_v38 = vld [vmem:[%s4792_s2 + $0x30] sm:$0xff]  ;;  %vm408_vm3 = vcmask 195584  }
  0x28   :  { %v96_v5 = vunpack.c.0.s8 %v95_v2  ;;  %v3842_v20 = vld [vmem:[%s4791_s1] sm:$0xff]   ;;  %v3354_v28 = vcombine.high %v74_v17, %v78_v18  ;;  %v3356_v31 = vcombine.high %v75_v24, %v79_v26  ;;  %v3353_v33 = vcombine.low %v74_v17, %v78_v18  ;;  %v83_v34 = vld [vmem:[%s4792_s2 + $0x48] sm:$0xff]  ;;  %v77_v42 = vld [vmem:[%s4792_s2 + $0x18] sm:$0xff] }
  0x29   :  { %v82_v32 = vld [vmem:[%s4792_s2 + $0x40] sm:$0xff]  ;;  %v3355_v39 = vcombine.low %v75_v24, %v79_v26  ;;  %v3364_v40 = vcombine.high %v83_v34, %v83_v34  ;;  %v3363_v41 = vcombine.low %v83_v34, %v83_v34  ;;  %v81_v43 = vld [vmem:[%s4792_s2 + $0x38] sm:$0xff]  ;;  %v3358_v45 = vcombine.high %v76_v37, %v80_v38  ;;  %v84_v46 = vld [vmem:[%s4792_s2 + $0x50] sm:$0xff] }
  0x2a   :  { %v99_v6 = vsub.s32 %v96_v5, %v4446_v4  ;;  %v3362_v35 = vcombine.high %v82_v32, %v82_v32  ;;  %v3361_v36 = vcombine.low %v82_v32, %v82_v32  ;;  %v3845_v47 = vld [vmem:[%s4790_s0] sm:$0xff]   ;;  %v3360_v49 = vcombine.high %v77_v42, %v81_v43  ;;  %v85_v51 = vld [vmem:[%s4792_s2 + $0x58] sm:$0xff] }
  0x2b   :  { %v420_v48 = vsel %vm412_vm2, %v3363_v41, 0  ;;  %v3357_v50 = vcombine.low %v76_v37, %v80_v38  ;;  %v3366_v52 = vcombine.high %v84_v46, %v84_v46  ;;  %v3365_v53 = vcombine.low %v84_v46, %v84_v46  ;;  %v3854_v58 = vld [vmem:[#allocation2 + $0x4] ss:$16 sps:$4 sm:$0xff]   ;;  %v3857_v60 = vld [vmem:[#allocation2 + $0xc] ss:$16 sps:$4 sm:$0xff]  }
  0x2c   :  { %v100_v9 = vrot.slane %v86_v7, %v99_v6  ;;  %v107_v10 = vrot.slane %v93_v8, %v99_v6  ;;  %v414_v44 = vsel %vm412_vm2, %v3361_v36, 0  ;;  %v3359_v54 = vcombine.low %v77_v42, %v81_v43  ;;  %v3852_v61 = vld [vmem:[#allocation2] ss:$16 sps:$4 sm:$0xff]   ;;  %v3860_v62 = vld [vmem:[#allocation2 + $0x24] ss:$16 sps:$4 sm:$0xff]  }
  0x2d   :  { %v3368_v55 = vcombine.high %v85_v51, %v85_v51  ;;  %v3367_v56 = vcombine.low %v85_v51, %v85_v51  ;;  %v426_v57 = vsel %vm412_vm2, %v3365_v53, 0  ;;  %v3855_v63 = vld [vmem:[#allocation2 + $0x8] ss:$16 sps:$4 sm:$0xff]   ;;  %v3863_v0 = vld [vmem:[#allocation2 + $0x2c] ss:$16 sps:$4 sm:$0xff]   ;;  %vm3323_vm4 = vcmask 7168  }
  0x2e   :  { %v108_v11 = vcombine.high %v100_v9, %v100_v9  ;;  %v116_v12 = vrot.slane %v100_v9, %v99_v6  ;;  %v109_v15 = vcombine.high %v107_v10, %v107_v10  ;;  %v123_v16 = vrot.slane %v107_v10, %v99_v6  ;;  %v3858_v1 = vld [vmem:[#allocation2 + $0x20] ss:$16 sps:$4 sm:$0xff]   ;;  %v3866_v2 = vld [vmem:[#allocation2 + $0x44] ss:$16 sps:$4 sm:$0xff]   ;;  %v3869_v5 = vld [vmem:[#allocation2 + $0x4c] ss:$16 sps:$4 sm:$0xff]  }
  0x2f   :  { %v432_v59 = vsel %vm412_vm2, %v3367_v56, 0  ;;  %v3867_v7 = vld [vmem:[#allocation2 + $0x48] ss:$16 sps:$4 sm:$0xff]   ;;  %v3872_v8 = vld [vmem:[#allocation2 + $0x64] ss:$16 sps:$4 sm:$0xff]  }
  0x30   :  { %v130_v13 = vrot.slane %v108_v11, %v99_v6  ;;  %v148_v14 = vsel %vm146_vm0, %v116_v12, 0  ;;  %v138_v19 = vcombine.high %v116_v12, %v116_v12  ;;  %v137_v21 = vrot.slane %v109_v15, %v99_v6  ;;  %v3864_v6 = vld [vmem:[#allocation2 + $0x40] ss:$16 sps:$4 sm:$0xff]   ;;  %v3875_v10 = vld [vmem:[#allocation2 + $0x6c] ss:$16 sps:$4 sm:$0xff]  }
  0x31   :  { %v139_v23 = vcombine.high %v123_v16, %v123_v16  ;;  %v160_v27 = vsel %vm146_vm0, %v123_v16, 0  ;;  %v3870_v9 = vld [vmem:[#allocation2 + $0x60] ss:$16 sps:$4 sm:$0xff]   ;;  %v3878_v11 = vld [vmem:[#allocation2 + $0x84] ss:$16 sps:$4 sm:$0xff]  }
  0x32   :  { %3344 = vmatprep.subr.msk.bf16.mxu0 %vm146_vm0, %v130_v13  ;;  %v140_v22 = vcombine.high %v130_v13, %v130_v13  ;;  %v154_v25 = vsel %vm146_vm0, %v138_v19, 0  ;;  %v141_v29 = vcombine.high %v137_v21, %v137_v21  ;;  %v3873_v12 = vld [vmem:[#allocation2 + $0x68] ss:$16 sps:$4 sm:$0xff]   ;;  %v3881_v13 = vld [vmem:[#allocation2 + $0x8c] ss:$16 sps:$4 sm:$0xff]  }
  0x33   :  { %172 = vmatpush1.bf16.msra.mxu0 %v148_v14  ;;  %v166_v30 = vsel %vm146_vm0, %v139_v23, 0  ;;  %v3876_v14 = vld [vmem:[#allocation2 + $0x80] ss:$16 sps:$4 sm:$0xff]   ;;  %v3884_v15 = vld [vmem:[#allocation2 + $0xa4] ss:$16 sps:$4 sm:$0xff]  }
  0x34   :  { %3348 = vmatprep.subr.msk.bf16.mxu0 %vm146_vm0, %v137_v21  ;;  %3346 = vmatprep.subr.msk.bf16.mxu1 %vm146_vm0, %v140_v22  ;;  %v3879_v16 = vld [vmem:[#allocation2 + $0x88] ss:$16 sps:$4 sm:$0xff]   ;;  %v3887_v17 = vld [vmem:[#allocation2 + $0xac] ss:$16 sps:$4 sm:$0xff]   ;;  %v3882_v18 = vld [vmem:[#allocation2 + $0xa0] ss:$16 sps:$4 sm:$0xff]  }
  0x35   :  { %215 = vmatpush1.bf16.msra.mxu1 %v154_v25  ;;  %v3890_v19 = vld [vmem:[#allocation2 + $0xc4] ss:$16 sps:$4 sm:$0xff]   ;;  %v3893_v21 = vld [vmem:[#allocation2 + $0xcc] ss:$16 sps:$4 sm:$0xff]   ;;  %v3888_v22 = vld [vmem:[#allocation2 + $0xc0] ss:$16 sps:$4 sm:$0xff]  }
  0x36   :  { %3345 = vmatmul.mubr.msk.bf16.vlgmr.msra.gmra.mrb[0].mxu0 %vm142_vm1, %v3842_v20  ;;  %3350 = vmatprep.subr.msk.bf16.mxu1 %vm146_vm0, %v141_v29  ;;  %v3896_v23 = vld [vmem:[#allocation2 + $0xe4] ss:$16 sps:$4 sm:$0xff]   ;;  %v3891_v24 = vld [vmem:[#allocation2 + $0xc8] ss:$16 sps:$4 sm:$0xff]   ;;  %v3899_v25 = vld [vmem:[#allocation2 + $0xec] ss:$16 sps:$4 sm:$0xff]  }
  0x37   :  { %258 = vmatpush1.bf16.msra.mxu0 %v160_v27  ;;  %289 = vmatprep.mubr.bf16.mxu0 %v4353_v3  ;;  %v3894_v26 = vld [vmem:[#allocation2 + $0xe0] ss:$16 sps:$4 sm:$0xff]   ;;  %v3902_v27 = vld [vmem:[#allocation2 + $0x104] ss:$16 sps:$4 sm:$0xff]   ;;  %v3905_v29 = vld [vmem:[#allocation2 + $0x10c] ss:$16 sps:$4 sm:$0xff]  }
  0x38   :  { %437 = vmatprep.subr.bf16.mxu0 %v3354_v28  ;;  %3347 = vmatmul.mubr.msk.bf16.vlgmr.msra.gmra.mrb[0].mxu1 %vm142_vm1, %v3842_v20  ;;  %v3897_v28 = vld [vmem:[#allocation2 + $0xe8] ss:$16 sps:$4 sm:$0xff]   ;;  %v3906_v34 = vld [vmem:[#allocation2 + $0x120] ss:$16 sps:$4 sm:$0xff]   ;;  %v3917_v37 = vld [vmem:[#allocation2 + $0x14c] ss:$16 sps:$4 sm:$0xff]  }
  0x39   :  { %301 = vmatpush1.bf16.msra.mxu1 %v166_v30  ;;  %332 = vmatprep.mubr.bf16.mxu1 %v4353_v3  ;;  %v3900_v30 = vld [vmem:[#allocation2 + $0x100] ss:$16 sps:$4 sm:$0xff]   ;;  %v3903_v32 = vld [vmem:[#allocation2 + $0x108] ss:$16 sps:$4 sm:$0xff]   ;;  %v3923_v41 = vld [vmem:[#allocation2 + $0x16c] ss:$16 sps:$4 sm:$0xff]  }
  0x3a   :  { %480 = vmatprep.subr.bf16.mxu1 %v3356_v31  ;;  %v3908_v31 = vld [vmem:[#allocation2 + $0x124] ss:$16 sps:$4 sm:$0xff]   ;;  %v3909_v36 = vld [vmem:[#allocation2 + $0x128] ss:$16 sps:$4 sm:$0xff]   ;;  %v3912_v38 = vld [vmem:[#allocation2 + $0x140] ss:$16 sps:$4 sm:$0xff]  }
  0x3b   :  { %v3918_v42 = vld [vmem:[#allocation2 + $0x160] ss:$16 sps:$4 sm:$0xff]   ;;  %v3926_v43 = vld [vmem:[#allocation2 + $0x184] ss:$16 sps:$4 sm:$0xff]   ;;  %v3933_v51 = vld [vmem:[#allocation2 + $0x1a8] ss:$16 sps:$4 sm:$0xff]  }
  0x3c   :  { %v3924_v46 = vld [vmem:[#allocation2 + $0x180] ss:$16 sps:$4 sm:$0xff]   ;;  %v3941_v53 = vld [vmem:[#allocation2 + $0x1cc] ss:$16 sps:$4 sm:$0xff]   ;;  %v3944_v56 = vld [vmem:[#allocation2 + $0x1e4] ss:$16 sps:$4 sm:$0xff]  }
  0x3e   :  { %3349 = vmatmul.mubr.msk.bf16.vlgmr.msra.gmra.mrb[4].mxu0 %vm142_vm1, %v3842_v20 }
  0x3f   :  { %438 = vmatpush1.bf16.msra.mxu0 %v3353_v33  ;;  %469 = vmatprep.mubr.bf16.mxu0 %v4353_v3  ;;  %v3911_v33 = vld [vmem:[#allocation2 + $0x12c] ss:$16 sps:$4 sm:$0xff]  }
  0x40   :  { %3369 = vmatprep.subr.msk.bf16.mxu0 %vm412_vm2, %v3362_v35  ;;  %3351 = vmatmul.mubr.msk.bf16.vlgmr.msra.gmra.mrb[4].mxu1 %vm142_vm1, %v3842_v20  ;;  %v3885_v20 = vld [vmem:[#allocation2 + $0xa8] ss:$16 sps:$4 sm:$0xff]   ;;  %v3914_v35 = vld [vmem:[#allocation2 + $0x144] ss:$16 sps:$4 sm:$0xff]  }
  0x41   :  { %481 = vmatpush1.bf16.msra.mxu1 %v3355_v39  ;;  %512 = vmatprep.mubr.bf16.mxu1 %v4353_v3  ;;  %v3920_v39 = vld [vmem:[#allocation2 + $0x164] ss:$16 sps:$4 sm:$0xff]  }
  0x42   :  { %3371 = vmatprep.subr.msk.bf16.mxu1 %vm412_vm2, %v3364_v40  ;;  %v3915_v40 = vld [vmem:[#allocation2 + $0x148] ss:$16 sps:$4 sm:$0xff]  }
  0x43   :  { %440 = vmatpush1.bf16.msra.mxu0 %v414_v44  ;;  %v3921_v44 = vld [vmem:[#allocation2 + $0x168] ss:$16 sps:$4 sm:$0xff]  }
  0x44   :  { %523 = vmatprep.subr.bf16.mxu0 %v3358_v45  ;;  %v3929_v45 = vld [vmem:[#allocation2 + $0x18c] ss:$16 sps:$4 sm:$0xff]  }
  0x45   :  { %483 = vmatpush1.bf16.msra.mxu1 %v420_v48  ;;  %v3927_v48 = vld [vmem:[#allocation2 + $0x188] ss:$16 sps:$4 sm:$0xff]  }
  0x46   :  { %3370 = vmatmul.mubr.msk.bf16.vlgmr.msra.gmra.mrb[0].mxu0 %vm408_vm3, %v3845_v47  ;;  %566 = vmatprep.subr.bf16.mxu1 %v3360_v49  ;;  %v3935_v49 = vld [vmem:[#allocation2 + $0x1ac] ss:$16 sps:$4 sm:$0xff]  }
  0x47   :  { %524 = vmatpush1.bf16.msra.mxu0 %v3357_v50  ;;  %555 = vmatprep.mubr.bf16.mxu0 %v4353_v3  ;;  %v3930_v50 = vld [vmem:[#allocation2 + $0x1a0] ss:$16 sps:$4 sm:$0xff]  }
  0x48   :  { %3373 = vmatprep.subr.msk.bf16.mxu0 %vm412_vm2, %v3366_v52  ;;  %3372 = vmatmul.mubr.msk.bf16.vlgmr.msra.gmra.mrb[0].mxu1 %vm408_vm3, %v3845_v47  ;;  %v3938_v52 = vld [vmem:[#allocation2 + $0x1c4] ss:$16 sps:$4 sm:$0xff]  }
  0x49   :  { %567 = vmatpush1.bf16.msra.mxu1 %v3359_v54  ;;  %598 = vmatprep.mubr.bf16.mxu1 %v4353_v3  ;;  %v3861_v3 = vld [vmem:[#allocation2 + $0x28] ss:$16 sps:$4 sm:$0xff]   ;;  %v3936_v54 = vld [vmem:[#allocation2 + $0x1c0] ss:$16 sps:$4 sm:$0xff]  }
  0x4a   :  { %3375 = vmatprep.subr.msk.bf16.mxu1 %vm412_vm2, %v3368_v55  ;;  %v3939_v55 = vld [vmem:[#allocation2 + $0x1c8] ss:$16 sps:$4 sm:$0xff]  }
  0x4b   :  { %526 = vmatpush1.bf16.msra.mxu0 %v426_v57  ;;  %v3947_v57 = vld [vmem:[#allocation2 + $0x1ec] ss:$16 sps:$4 sm:$0xff]  }
  0x4c   :  { %1481 = vmatprep.subr.bf16.mxu0 %v3854_v58  ;;  %v3942_v58 = vld [vmem:[#allocation2 + $0x1e0] ss:$16 sps:$4 sm:$0xff]  }
  0x4d   :  { %569 = vmatpush1.bf16.msra.mxu1 %v432_v59  ;;  %v3945_v59 = vld [vmem:[#allocation2 + $0x1e8] ss:$16 sps:$4 sm:$0xff]  }
  0x4e   :  { %3374 = vmatmul.mubr.msk.bf16.vlgmr.msra.gmra.mrb[4].mxu0 %vm408_vm3, %v3845_v47  ;;  %1567 = vmatprep.subr.bf16.mxu1 %v3857_v60  ;;  %v3950_v60 = vld [vmem:[#allocation2 + $0x204] ss:$16 sps:$4 sm:$0xff]  }
  0x4f   :  { %1482 = vmatpush1.bf16.msra.mxu0 %v3852_v61  ;;  %v3953_v61 = vld [vmem:[#allocation2 + $0x20c] ss:$16 sps:$4 sm:$0xff]  }
  0x50   :  { %3376 = vmatmul.mubr.msk.bf16.vlgmr.msra.gmra.mrb[4].mxu1 %vm408_vm3, %v3845_v47  ;;  %1483 = vmatprep.subr.bf16.mxu0 %v3860_v62  ;;  %v3932_v47 = vld [vmem:[#allocation2 + $0x1a4] ss:$16 sps:$4 sm:$0xff]   ;;  %v4525_v62 = vsub.s32 0, %v4446_v4 }
  0x51   :  { %1568 = vmatpush1.bf16.msra.mxu1 %v3855_v63  ;;  %v609_v63 = vld [vmem:[%s4794_s4] sm:$0xff] }
  0x52   :  { %1569 = vmatprep.subr.bf16.mxu1 %v3863_v0  ;;  %v4531_v0 = vsub.s32 1, %v4446_v4 }
  0x53   :  { %1484 = vmatpush1.bf16.msra.mxu0 %v3858_v1  ;;  %v4534_v1 = vsub.s32 2, %v4446_v4 }
  0x54   :  { %1485 = vmatprep.subr.bf16.mxu0 %v3866_v2  ;;  %v4537_v2 = vsub.s32 3, %v4446_v4 }
  0x55   :  { %1570 = vmatpush1.bf16.msra.mxu1 %v3861_v3  ;;  %v614_v3 = vrot.slane %v609_v63, %v4525_v62 }
  0x56   :  { %1571 = vmatprep.subr.bf16.mxu1 %v3869_v5  ;;  %v618_v5 = vrot.slane %v609_v63, %v4531_v0 }
  0x57   :  { %1486 = vmatpush1.bf16.msra.mxu0 %v3864_v6  ;;  %v629_v6 = vsub.s32 4, %v4446_v4 }
  0x58   :  { %1487 = vmatprep.subr.bf16.mxu0 %v3872_v8 }
  0x59   :  { %1572 = vmatpush1.bf16.msra.mxu1 %v3867_v7  ;;  %v622_v7 = vrot.slane %v609_v63, %v4534_v1 }
  0x5a   :  { %1573 = vmatprep.subr.bf16.mxu1 %v3875_v10  ;;  %v626_v10 = vrot.slane %v609_v63, %v4537_v2 }
  0x5b   :  { %1488 = vmatpush1.bf16.msra.mxu0 %v3870_v9  ;;  %v633_v9 = vsub.s32 5, %v4446_v4 }
  0x5c   :  { %1489 = vmatprep.subr.bf16.mxu0 %v3878_v11 }
  0x5d   :  { %1574 = vmatpush1.bf16.msra.mxu1 %v3873_v12 }
  0x5e   :  { %1575 = vmatprep.subr.bf16.mxu1 %v3881_v13 }
  0x5f   :  { %1490 = vmatpush1.bf16.msra.mxu0 %v3876_v14 }
  0x60   :  { %1491 = vmatprep.subr.bf16.mxu0 %v3884_v15 }
  0x61   :  { %1576 = vmatpush1.bf16.msra.mxu1 %v3879_v16 }
  0x62   :  { %1577 = vmatprep.subr.bf16.mxu1 %v3887_v17 }
  0x63   :  { %1492 = vmatpush1.bf16.msra.mxu0 %v3882_v18  ;;  %v630_v18 = vrot.slane %v609_v63, %v629_v6  ;;  %v3965_v6 = vld [vmem:[#allocation2 + $0x24c] ss:$16 sps:$4 sm:$0xff]  }
  0x64   :  { %1493 = vmatprep.subr.bf16.mxu0 %v3890_v19 }
  0x65   :  { %1578 = vmatpush1.bf16.msra.mxu1 %v3885_v20 }
  0x66   :  { %1579 = vmatprep.subr.bf16.mxu1 %v3893_v21  ;;  %v637_v21 = vsub.s32 6, %v4446_v4 }
  0x67   :  { %1494 = vmatpush1.bf16.msra.mxu0 %v3888_v22 }
  0x68   :  { %1495 = vmatprep.subr.bf16.mxu0 %v3896_v23  ;;  %v634_v23 = vrot.slane %v609_v63, %v633_v9 }
  0x69   :  { %1580 = vmatpush1.bf16.msra.mxu1 %v3891_v24 }
  0x6a   :  { %1581 = vmatprep.subr.bf16.mxu1 %v3899_v25 }
  0x6b   :  { %1496 = vmatpush1.bf16.msra.mxu0 %v3894_v26  ;;  %v641_v26 = vsub.s32 7, %v4446_v4 }
  0x6c   :  { %1497 = vmatprep.subr.bf16.mxu0 %v3902_v27 }
  0x6d   :  { %1582 = vmatpush1.bf16.msra.mxu1 %v3897_v28 }
  0x6e   :  { %1583 = vmatprep.subr.bf16.mxu1 %v3905_v29 }
  0x6f   :  { %1498 = vmatpush1.bf16.msra.mxu0 %v3900_v30 }
  0x70   :  { %1499 = vmatprep.subr.bf16.mxu0 %v3908_v31 }
  0x71   :  { %1584 = vmatpush1.bf16.msra.mxu1 %v3903_v32 }
  0x72   :  { %1585 = vmatprep.subr.bf16.mxu1 %v3911_v33 }
  0x73   :  { %1500 = vmatpush1.bf16.msra.mxu0 %v3906_v34 }
  0x74   :  { %1501 = vmatprep.subr.bf16.mxu0 %v3914_v35 }
  0x75   :  { %1586 = vmatpush1.bf16.msra.mxu1 %v3909_v36 }
  0x76   :  { %1587 = vmatprep.subr.bf16.mxu1 %v3917_v37 }
  0x77   :  { %1502 = vmatpush1.bf16.msra.mxu0 %v3912_v38  ;;  %v638_v38 = vrot.slane %v609_v63, %v637_v21  ;;  %v3971_v21 = vld [vmem:[#allocation2 + $0x26c] ss:$16 sps:$4 sm:$0xff]  }
  0x78   :  { %1503 = vmatprep.subr.bf16.mxu0 %v3920_v39 }
  0x79   :  { %1588 = vmatpush1.bf16.msra.mxu1 %v3915_v40 }
  0x7a   :  { %1589 = vmatprep.subr.bf16.mxu1 %v3923_v41  ;;  %v3948_v41 = vld [vmem:[#allocation2 + $0x200] ss:$16 sps:$4 sm:$0xff]  }
  0x7b   :  { %1504 = vmatpush1.bf16.msra.mxu0 %v3918_v42  ;;  %v3951_v42 = vld [vmem:[#allocation2 + $0x208] ss:$16 sps:$4 sm:$0xff]  }
  0x7c   :  { %1505 = vmatprep.subr.bf16.mxu0 %v3926_v43 }
  0x7d   :  { %1590 = vmatpush1.bf16.msra.mxu1 %v3921_v44  ;;  %v642_v44 = vrot.slane %v609_v63, %v641_v26  ;;  %v3974_v26 = vld [vmem:[#allocation2 + $0x284] ss:$16 sps:$4 sm:$0xff]  }
  0x7e   :  { %1591 = vmatprep.subr.bf16.mxu1 %v3929_v45 }
  0x7f   :  { %1506 = vmatpush1.bf16.msra.mxu0 %v3924_v46  ;;  %v3956_v46 = vld [vmem:[#allocation2 + $0x224] ss:$16 sps:$4 sm:$0xff]  }
  0x80   :  { %1507 = vmatprep.subr.bf16.mxu0 %v3932_v47  ;;  %v3959_v47 = vld [vmem:[#allocation2 + $0x22c] ss:$16 sps:$4 sm:$0xff]  }
  0x81   :  { %1592 = vmatpush1.bf16.msra.mxu1 %v3927_v48 }
  0x82   :  { %1593 = vmatprep.subr.bf16.mxu1 %v3935_v49 }
  0x83   :  { %1508 = vmatpush1.bf16.msra.mxu0 %v3930_v50 }
  0x84   :  { %1509 = vmatprep.subr.bf16.mxu0 %v3938_v52 }
  0x85   :  { %1594 = vmatpush1.bf16.msra.mxu1 %v3933_v51 }
  0x86   :  { %1595 = vmatprep.subr.bf16.mxu1 %v3941_v53 }
  0x87   :  { %1510 = vmatpush1.bf16.msra.mxu0 %v3936_v54 }
  0x88   :  { %1511 = vmatprep.subr.bf16.mxu0 %v3944_v56 }
  0x89   :  { %1596 = vmatpush1.bf16.msra.mxu1 %v3939_v55  ;;  %v3954_v55 = vld [vmem:[#allocation2 + $0x220] ss:$16 sps:$4 sm:$0xff]  }
  0x8a   :  { %1597 = vmatprep.subr.bf16.mxu1 %v3947_v57 }
  0x8b   :  { %1512 = vmatpush1.bf16.msra.mxu0 %v3942_v58 }
  0x8c   :  { %1524 = vmatprep.subr.bf16.mxu0 %v3950_v60  ;;  %v3962_v60 = vld [vmem:[#allocation2 + $0x244] ss:$16 sps:$4 sm:$0xff]  }
  0x8d   :  { %1598 = vmatpush1.bf16.msra.mxu1 %v3945_v59  ;;  %v3957_v59 = vld [vmem:[#allocation2 + $0x228] ss:$16 sps:$4 sm:$0xff]  }
  0x8e   :  { %1610 = vmatprep.subr.bf16.mxu1 %v3953_v61 }
 0x119   :  { %v471_v8 = vpop.f32.mrb[0].mxu0 }
 0x11a   :  { %v651_v11 = vadd.f32 %v614_v3, %v471_v8  ;;  %v473_v12 = vpop.f32.mrb[1].mxu0 }
 0x11b   :  { %v652_v13 = vadd.f32 %v618_v5, %v473_v12  ;;  %v475_v14 = vpop.f32.mrb[2].mxu0  ;;  %v514_v15 = vpop.f32.mrb[0].mxu1 }
 0x11c   :  { %v659_v16 = vadd.f32 %v614_v3, %v475_v14  ;;  %v477_v17 = vpop.f32.mrb[3].mxu0  ;;  %v653_v19 = vadd.f32 %v622_v7, %v514_v15  ;;  %v516_v20 = vpop.f32.mrb[1].mxu1  ;;  %v667_v27 = vmax.f32 %v651_v11, 0.0 }
 0x11d   :  { %v660_v22 = vadd.f32 %v618_v5, %v477_v17  ;;  %v654_v24 = vadd.f32 %v626_v10, %v516_v20  ;;  %v518_v25 = vpop.f32.mrb[2].mxu1  ;;  %v668_v32 = vmax.f32 %v652_v13, 0.0  ;;  %v3960_v17 = vld [vmem:[#allocation2 + $0x240] ss:$16 sps:$4 sm:$0xff]   ;;  %v3968_v20 = vld [vmem:[#allocation2 + $0x264] ss:$16 sps:$4 sm:$0xff]  }
 0x11e   :  { %v675_v28 = vmax.f32 %v659_v16, 0.0  ;;  %v669_v29 = vmax.f32 %v653_v19, 0.0  ;;  %v661_v30 = vadd.f32 %v622_v7, %v518_v25  ;;  %v520_v31 = vpop.f32.mrb[3].mxu1  ;;  %v3969_v25 = vld [vmem:[#allocation2 + $0x268] ss:$16 sps:$4 sm:$0xff]  }
 0x11f   :  { %v676_v33 = vmax.f32 %v660_v22, 0.0  ;;  %v670_v34 = vmax.f32 %v654_v24, 0.0  ;;  %v662_v35 = vadd.f32 %v626_v10, %v520_v31  ;;  %v3966_v24 = vld [vmem:[#allocation2 + $0x260] ss:$16 sps:$4 sm:$0xff]   ;;  %v3983_v31 = vld [vmem:[#allocation2 + $0x2ac] ss:$16 sps:$4 sm:$0xff]  }
 0x120   :  { %v683_v36 = vpack.c.bf16 %v675_v28, %v667_v27  ;;  %v677_v37 = vmax.f32 %v661_v30, 0.0  ;;  %v3977_v27 = vld [vmem:[#allocation2 + $0x28c] ss:$16 sps:$4 sm:$0xff]   ;;  %v3972_v28 = vld [vmem:[#allocation2 + $0x280] ss:$16 sps:$4 sm:$0xff]  }
 0x121   :  { %v684_v39 = vpack.c.bf16 %v676_v33, %v668_v32  ;;  %v557_v40 = vpop.f32.mrb[4].mxu0  ;;  %v678_v43 = vmax.f32 %v662_v35, 0.0  ;;  %v3980_v30 = vld [vmem:[#allocation2 + $0x2a4] ss:$16 sps:$4 sm:$0xff]   ;;  %v3978_v32 = vld [vmem:[#allocation2 + $0x2a0] ss:$16 sps:$4 sm:$0xff]  }
 0x122   :  { %v655_v45 = vadd.f32 %v630_v18, %v557_v40  ;;  %v559_v4 = vpop.f32.mrb[5].mxu0  ;;  %v4547_v48 = vpack.c.bf16 %v677_v37, %v669_v29  ;;  %v3975_v29 = vld [vmem:[#allocation2 + $0x288] ss:$16 sps:$4 sm:$0xff]   ;;  %v3989_v35 = vld [vmem:[#allocation2 + $0x2cc] ss:$16 sps:$4 sm:$0xff]  }
 0x123   :  { %v656_v49 = vadd.f32 %v634_v23, %v559_v4  ;;  %v561_v50 = vpop.f32.mrb[6].mxu0  ;;  %1513 = vmatprep.mubr.bf16.mxu0 %v684_v39  ;;  %1599 = vmatprep.mubr.bf16.mxu1 %v684_v39  ;;  %v686_v51 = vpack.c.bf16 %v678_v43, %v670_v34  ;;  %v600_v52 = vpop.f32.mrb[4].mxu1  ;;  %v3981_v33 = vld [vmem:[#allocation2 + $0x2a8] ss:$16 sps:$4 sm:$0xff]   ;;  %v3986_v34 = vld [vmem:[#allocation2 + $0x2c4] ss:$16 sps:$4 sm:$0xff]  }
 0x124   :  { %v663_v53 = vadd.f32 %v630_v18, %v561_v50  ;;  %v563_v54 = vpop.f32.mrb[7].mxu0  ;;  %1514 = vmatmul.mubr.bf16.vlgmr.msra.gmra.mrb[8].mxu0 %v683_v36  ;;  %1600 = vmatmul.mubr.bf16.vlgmr.msra.gmra.mrb[8].mxu1 %v683_v36  ;;  %v657_v56 = vadd.f32 %v638_v38, %v600_v52  ;;  %v602_v57 = vpop.f32.mrb[5].mxu1  ;;  %v671_v3 = vmax.f32 %v655_v45, 0.0  ;;  %v3963_v18 = vld [vmem:[#allocation2 + $0x248] ss:$16 sps:$4 sm:$0xff]  }
 0x125   :  { %v664_v58 = vadd.f32 %v634_v23, %v563_v54  ;;  %1525 = vmatpush1.bf16.msra.mxu0 %v3948_v41  ;;  %1611 = vmatpush1.bf16.msra.mxu1 %v3951_v42  ;;  %v658_v61 = vadd.f32 %v642_v44, %v602_v57  ;;  %v604_v63 = vpop.f32.mrb[6].mxu1  ;;  %v672_v10 = vmax.f32 %v656_v49, 0.0  ;;  %v3984_v36 = vld [vmem:[#allocation2 + $0x2c0] ss:$16 sps:$4 sm:$0xff]   ;;  %v3987_v37 = vld [vmem:[#allocation2 + $0x2c8] ss:$16 sps:$4 sm:$0xff]  }
 0x126   :  { %v679_v5 = vmax.f32 %v663_v53, 0.0  ;;  %1526 = vmatprep.subr.bf16.mxu0 %v3956_v46  ;;  %1612 = vmatprep.subr.bf16.mxu1 %v3959_v47  ;;  %v673_v7 = vmax.f32 %v657_v56, 0.0  ;;  %v665_v8 = vadd.f32 %v638_v38, %v604_v63  ;;  %v606_v9 = vpop.f32.mrb[7].mxu1  ;;  %v3992_v38 = vld [vmem:[#allocation2 + $0x2e4] ss:$16 sps:$4 sm:$0xff]  }
 0x127   :  { %v680_v11 = vmax.f32 %v664_v58, 0.0  ;;  %v674_v12 = vmax.f32 %v658_v61, 0.0  ;;  %1556 = vmatprep.mubr.bf16.mxu0 %v686_v51  ;;  %1642 = vmatprep.mubr.bf16.mxu1 %v686_v51  ;;  %v666_v13 = vadd.f32 %v642_v44, %v606_v9  ;;  %v3995_v39 = vld [vmem:[#allocation2 + $0x2ec] ss:$16 sps:$4 sm:$0xff]   ;;  %v3990_v40 = vld [vmem:[#allocation2 + $0x2e0] ss:$16 sps:$4 sm:$0xff]  }
 0x128   :  { %v4549_v14 = vpack.c.bf16 %v679_v5, %v671_v3  ;;  %v681_v15 = vmax.f32 %v665_v8, 0.0  ;;  %v3993_v41 = vld [vmem:[#allocation2 + $0x2e8] ss:$16 sps:$4 sm:$0xff]   ;;  %v3998_v42 = vld [vmem:[#allocation2 + $0x304] ss:$16 sps:$4 sm:$0xff]  }
 0x129   :  { %v4551_v16 = vpack.c.bf16 %v680_v11, %v672_v10  ;;  %1527 = vmatpush1.bf16.msra.mxu0 %v3954_v55  ;;  %1613 = vmatpush1.bf16.msra.mxu1 %v3957_v59  ;;  %v682_v19 = vmax.f32 %v666_v13, 0.0  ;;  %v4001_v43 = vld [vmem:[#allocation2 + $0x30c] ss:$16 sps:$4 sm:$0xff]   ;;  %v3996_v44 = vld [vmem:[#allocation2 + $0x300] ss:$16 sps:$4 sm:$0xff]  }
 0x12a   :  { %1528 = vmatprep.subr.bf16.mxu0 %v3962_v60  ;;  %1614 = vmatprep.subr.bf16.mxu1 %v3965_v6  ;;  %v4553_v22 = vpack.c.bf16 %v681_v15, %v673_v7  ;;  %v3999_v45 = vld [vmem:[#allocation2 + $0x308] ss:$16 sps:$4 sm:$0xff]   ;;  %v4004_v4 = vld [vmem:[#allocation2 + $0x324] ss:$16 sps:$4 sm:$0xff]   ;;  %v4007_v46 = vld [vmem:[#allocation2 + $0x32c] ss:$16 sps:$4 sm:$0xff]  }
 0x12b   :  { %v4555_v23 = vpack.c.bf16 %v682_v19, %v674_v12  ;;  %v4002_v47 = vld [vmem:[#allocation2 + $0x320] ss:$16 sps:$4 sm:$0xff]   ;;  %v4005_v49 = vld [vmem:[#allocation2 + $0x328] ss:$16 sps:$4 sm:$0xff]   ;;  %v4010_v50 = vld [vmem:[#allocation2 + $0x344] ss:$16 sps:$4 sm:$0xff]  }
 0x12c   :  { %v4013_v51 = vld [vmem:[#allocation2 + $0x34c] ss:$16 sps:$4 sm:$0xff]   ;;  %v4008_v52 = vld [vmem:[#allocation2 + $0x340] ss:$16 sps:$4 sm:$0xff]   ;;  %v4011_v53 = vld [vmem:[#allocation2 + $0x348] ss:$16 sps:$4 sm:$0xff]  }
 0x12d   :  { %1529 = vmatpush1.bf16.msra.mxu0 %v3960_v17  ;;  %1615 = vmatpush1.bf16.msra.mxu1 %v3963_v18  ;;  %v4016_v54 = vld [vmem:[#allocation2 + $0x364] ss:$16 sps:$4 sm:$0xff]   ;;  %v4019_v55 = vld [vmem:[#allocation2 + $0x36c] ss:$16 sps:$4 sm:$0xff]   ;;  %v4014_v56 = vld [vmem:[#allocation2 + $0x360] ss:$16 sps:$4 sm:$0xff]  }
 0x12e   :  { %1530 = vmatprep.subr.bf16.mxu0 %v3968_v20  ;;  %1616 = vmatprep.subr.bf16.mxu1 %v3971_v21  ;;  %v4017_v57 = vld [vmem:[#allocation2 + $0x368] ss:$16 sps:$4 sm:$0xff]   ;;  %v4022_v58 = vld [vmem:[#allocation2 + $0x384] ss:$16 sps:$4 sm:$0xff]   ;;  %v4025_v59 = vld [vmem:[#allocation2 + $0x38c] ss:$16 sps:$4 sm:$0xff]  }
 0x12f   :  { %v4020_v60 = vld [vmem:[#allocation2 + $0x380] ss:$16 sps:$4 sm:$0xff]   ;;  %v4023_v61 = vld [vmem:[#allocation2 + $0x388] ss:$16 sps:$4 sm:$0xff]   ;;  %v4028_v63 = vld [vmem:[#allocation2 + $0x3a4] ss:$16 sps:$4 sm:$0xff]  }
 0x130   :  { %v4031_v3 = vld [vmem:[#allocation2 + $0x3ac] ss:$16 sps:$4 sm:$0xff]   ;;  %v4026_v5 = vld [vmem:[#allocation2 + $0x3a0] ss:$16 sps:$4 sm:$0xff]   ;;  %v4029_v6 = vld [vmem:[#allocation2 + $0x3a8] ss:$16 sps:$4 sm:$0xff]  }
 0x131   :  { %1531 = vmatpush1.bf16.msra.mxu0 %v3966_v24  ;;  %1617 = vmatpush1.bf16.msra.mxu1 %v3969_v25  ;;  %v4034_v7 = vld [vmem:[#allocation2 + $0x3c4] ss:$16 sps:$4 sm:$0xff]   ;;  %v4037_v8 = vld [vmem:[#allocation2 + $0x3cc] ss:$16 sps:$4 sm:$0xff]   ;;  %v4032_v9 = vld [vmem:[#allocation2 + $0x3c0] ss:$16 sps:$4 sm:$0xff]  }
 0x132   :  { %1532 = vmatprep.subr.bf16.mxu0 %v3974_v26  ;;  %1618 = vmatprep.subr.bf16.mxu1 %v3977_v27  ;;  %v4035_v10 = vld [vmem:[#allocation2 + $0x3c8] ss:$16 sps:$4 sm:$0xff]   ;;  %v4040_v11 = vld [vmem:[#allocation2 + $0x3e4] ss:$16 sps:$4 sm:$0xff]   ;;  %v4043_v12 = vld [vmem:[#allocation2 + $0x3ec] ss:$16 sps:$4 sm:$0xff]  }
 0x133   :  { %v4038_v13 = vld [vmem:[#allocation2 + $0x3e0] ss:$16 sps:$4 sm:$0xff]   ;;  %v4041_v15 = vld [vmem:[#allocation2 + $0x3e8] ss:$16 sps:$4 sm:$0xff]  }
 0x134   :  { %v4044_v17 = vld [vmem:[%s4799_s9 + $0x40] sm:$0xff]   ;;  %v4048_v21 = vld [vmem:[%s4799_s9 + $0x48] sm:$0xff]   ;;  %v4052_v27 = vld [vmem:[%s4799_s9 + $0x50] sm:$0xff]  }
 0x135   :  { %1533 = vmatpush1.bf16.msra.mxu0 %v3972_v28  ;;  %1619 = vmatpush1.bf16.msra.mxu1 %v3975_v29  ;;  %v4045_v18 = vld [vmem:[%s4799_s9 + $0xc0] sm:$0xff]   ;;  %v4049_v24 = vld [vmem:[%s4799_s9 + $0xc8] sm:$0xff]   ;;  %v4054_v28 = vld [vmem:[%s4799_s9 + $0x10] sm:$0xff]  }
 0x136   :  { %1534 = vmatprep.subr.bf16.mxu0 %v3980_v30  ;;  %1620 = vmatprep.subr.bf16.mxu1 %v3983_v31  ;;  %v4046_v19 = vld [vmem:[%s4799_s9] sm:$0xff]   ;;  %v4050_v25 = vld [vmem:[%s4799_s9 + $0x8] sm:$0xff]   ;;  %v4055_v29 = vld [vmem:[%s4799_s9 + $0x90] sm:$0xff]  }
 0x137   :  { %v4047_v20 = vld [vmem:[%s4799_s9 + $0x80] sm:$0xff]   ;;  %v4051_v26 = vld [vmem:[%s4799_s9 + $0x88] sm:$0xff]   ;;  %v4056_v30 = vld [vmem:[%s4799_s9 + $0x58] sm:$0xff]  }
 0x138   :  { %v4057_v31 = vld [vmem:[%s4799_s9 + $0xd8] sm:$0xff]  }
 0x139   :  { %1535 = vmatpush1.bf16.msra.mxu0 %v3978_v32  ;;  %1621 = vmatpush1.bf16.msra.mxu1 %v3981_v33  ;;  %v4058_v32 = vld [vmem:[%s4799_s9 + $0x18] sm:$0xff]  }
 0x13a   :  { %1536 = vmatprep.subr.bf16.mxu0 %v3986_v34  ;;  %1622 = vmatprep.subr.bf16.mxu1 %v3989_v35  ;;  %v4059_v33 = vld [vmem:[%s4799_s9 + $0x98] sm:$0xff]   ;;  %v4060_v34 = vld [vmem:[%s4799_s9 + $0x60] sm:$0xff]  }
 0x13b   :  { %v4061_v35 = vld [vmem:[%s4799_s9 + $0xe0] sm:$0xff]  }
 0x13d   :  { %1537 = vmatpush1.bf16.msra.mxu0 %v3984_v36  ;;  %1623 = vmatpush1.bf16.msra.mxu1 %v3987_v37  ;;  %v4062_v36 = vld [vmem:[%s4799_s9 + $0x20] sm:$0xff]  }
 0x13e   :  { %1538 = vmatprep.subr.bf16.mxu0 %v3992_v38  ;;  %1624 = vmatprep.subr.bf16.mxu1 %v3995_v39  ;;  %v4063_v37 = vld [vmem:[%s4799_s9 + $0xa0] sm:$0xff]   ;;  %v4064_v38 = vld [vmem:[%s4799_s9 + $0x68] sm:$0xff]  }
 0x13f   :  { %v4065_v39 = vld [vmem:[%s4799_s9 + $0xe8] sm:$0xff]  }
 0x141   :  { %1539 = vmatpush1.bf16.msra.mxu0 %v3990_v40  ;;  %1625 = vmatpush1.bf16.msra.mxu1 %v3993_v41  ;;  %v4066_v40 = vld [vmem:[%s4799_s9 + $0x28] sm:$0xff]  }
 0x142   :  { %1540 = vmatprep.subr.bf16.mxu0 %v3998_v42  ;;  %1626 = vmatprep.subr.bf16.mxu1 %v4001_v43  ;;  %v4067_v41 = vld [vmem:[%s4799_s9 + $0xa8] sm:$0xff]   ;;  %v4068_v42 = vld [vmem:[%s4799_s9 + $0x70] sm:$0xff]  }
 0x143   :  { %v4069_v43 = vld [vmem:[%s4799_s9 + $0xf0] sm:$0xff]  }
 0x145   :  { %1541 = vmatpush1.bf16.msra.mxu0 %v3996_v44  ;;  %1627 = vmatpush1.bf16.msra.mxu1 %v3999_v45  ;;  %v4070_v44 = vld [vmem:[%s4799_s9 + $0x30] sm:$0xff]  }
 0x146   :  { %1542 = vmatprep.subr.bf16.mxu0 %v4004_v4  ;;  %1628 = vmatprep.subr.bf16.mxu1 %v4007_v46  ;;  %v4071_v45 = vld [vmem:[%s4799_s9 + $0xb0] sm:$0xff]   ;;  %v4072_v4 = vld [vmem:[%s4799_s9 + $0x78] sm:$0xff]  }
 0x147   :  { %v4073_v46 = vld [vmem:[%s4799_s9 + $0xf8] sm:$0xff]  }
 0x149   :  { %1543 = vmatpush1.bf16.msra.mxu0 %v4002_v47  ;;  %1629 = vmatpush1.bf16.msra.mxu1 %v4005_v49  ;;  %v4074_v47 = vld [vmem:[%s4799_s9 + $0x38] sm:$0xff]  }
 0x14a   :  { %1544 = vmatprep.subr.bf16.mxu0 %v4010_v50  ;;  %1630 = vmatprep.subr.bf16.mxu1 %v4013_v51  ;;  %v4075_v49 = vld [vmem:[%s4799_s9 + $0xb8] sm:$0xff]   ;;  %v4078_v50 = vld [vmem:[#allocation4 + $0x4] ss:$16 sps:$4 sm:$0xff]  }
 0x14b   :  { %v4081_v51 = vld [vmem:[#allocation4 + $0xc] ss:$16 sps:$4 sm:$0xff]  }
 0x14d   :  { %1545 = vmatpush1.bf16.msra.mxu0 %v4008_v52  ;;  %1631 = vmatpush1.bf16.msra.mxu1 %v4011_v53  ;;  %v819_v52 = vld [vmem:[%s4796_s6] sm:$0xf] }
 0x14e   :  { %1546 = vmatprep.subr.bf16.mxu0 %v4016_v54  ;;  %1632 = vmatprep.subr.bf16.mxu1 %v4019_v55  ;;  %v824_v53 = vrot.slane %v819_v52, %v4525_v62  ;;  %v832_v54 = vrot.slane %v819_v52, %v4534_v1  ;;  %v828_v55 = vrot.slane %v819_v52, %v4531_v0 }
 0x151   :  { %1547 = vmatpush1.bf16.msra.mxu0 %v4014_v56  ;;  %1633 = vmatpush1.bf16.msra.mxu1 %v4017_v57  ;;  %v836_v56 = vrot.slane %v819_v52, %v4537_v2  ;;  %v4112_v52 = vld [vmem:[#allocation4 + $0xc0] ss:$16 sps:$4 sm:$0xff]  }
 0x152   :  { %1548 = vmatprep.subr.bf16.mxu0 %v4022_v58  ;;  %1634 = vmatprep.subr.bf16.mxu1 %v4025_v59 }
 0x155   :  { %1549 = vmatpush1.bf16.msra.mxu0 %v4020_v60  ;;  %1635 = vmatpush1.bf16.msra.mxu1 %v4023_v61 }
 0x156   :  { %1550 = vmatprep.subr.bf16.mxu0 %v4028_v63  ;;  %1636 = vmatprep.subr.bf16.mxu1 %v4031_v3 }
 0x159   :  { %1551 = vmatpush1.bf16.msra.mxu0 %v4026_v5  ;;  %1637 = vmatpush1.bf16.msra.mxu1 %v4029_v6 }
 0x15a   :  { %1552 = vmatprep.subr.bf16.mxu0 %v4034_v7  ;;  %1638 = vmatprep.subr.bf16.mxu1 %v4037_v8 }
 0x15d   :  { %1553 = vmatpush1.bf16.msra.mxu0 %v4032_v9  ;;  %1639 = vmatpush1.bf16.msra.mxu1 %v4035_v10 }
 0x15e   :  { %1554 = vmatprep.subr.bf16.mxu0 %v4040_v11  ;;  %1640 = vmatprep.subr.bf16.mxu1 %v4043_v12 }
 0x161   :  { %1555 = vmatpush1.bf16.msra.mxu0 %v4038_v13  ;;  %1641 = vmatpush1.bf16.msra.mxu1 %v4041_v15 }
 0x162   :  { %3698 = vmatprep.subr.bf16.mxu0 %v4044_v17  ;;  %3720 = vmatprep.subr.bf16.mxu1 %v4045_v18 }
 0x164   :  { %1557 = vmatmul.mubr.bf16.vlgmr.msra.gmra.mrb[8].mxu0 %v4547_v48  ;;  %1643 = vmatmul.mubr.bf16.vlgmr.msra.gmra.mrb[8].mxu1 %v4547_v48  ;;  %v4053_v48 = vld [vmem:[%s4799_s9 + $0xd0] sm:$0xff]  }
 0x165   :  { %3699 = vmatpush3.bf16.msra.mxu0 %v4046_v19  ;;  %3721 = vmatpush3.bf16.msra.mxu1 %v4047_v20 }
 0x166   :  { %3700 = vmatprep.subr.bf16.mxu0 %v4048_v21  ;;  %3722 = vmatprep.subr.bf16.mxu1 %v4049_v24 }
 0x169   :  { %3701 = vmatpush3.bf16.msra.mxu0 %v4050_v25  ;;  %3723 = vmatpush3.bf16.msra.mxu1 %v4051_v26 }
 0x16a   :  { %3702 = vmatprep.subr.bf16.mxu0 %v4052_v27  ;;  %3724 = vmatprep.subr.bf16.mxu1 %v4053_v48 }
 0x16d   :  { %3703 = vmatpush3.bf16.msra.mxu0 %v4054_v28  ;;  %3725 = vmatpush3.bf16.msra.mxu1 %v4055_v29  ;;  %v4076_v29 = vld [vmem:[#allocation4] ss:$16 sps:$4 sm:$0xff]  }
 0x16e   :  { %3704 = vmatprep.subr.bf16.mxu0 %v4056_v30  ;;  %3726 = vmatprep.subr.bf16.mxu1 %v4057_v31  ;;  %v4079_v30 = vld [vmem:[#allocation4 + $0x8] ss:$16 sps:$4 sm:$0xff]   ;;  %v4084_v31 = vld [vmem:[#allocation4 + $0x24] ss:$16 sps:$4 sm:$0xff]  }
 0x171   :  { %3705 = vmatpush3.bf16.msra.mxu0 %v4058_v32  ;;  %3727 = vmatpush3.bf16.msra.mxu1 %v4059_v33  ;;  %v4087_v32 = vld [vmem:[#allocation4 + $0x2c] ss:$16 sps:$4 sm:$0xff]   ;;  %v4082_v33 = vld [vmem:[#allocation4 + $0x20] ss:$16 sps:$4 sm:$0xff]  }
 0x172   :  { %3706 = vmatprep.subr.bf16.mxu0 %v4060_v34  ;;  %3728 = vmatprep.subr.bf16.mxu1 %v4061_v35  ;;  %v4085_v34 = vld [vmem:[#allocation4 + $0x28] ss:$16 sps:$4 sm:$0xff]   ;;  %v4090_v35 = vld [vmem:[#allocation4 + $0x44] ss:$16 sps:$4 sm:$0xff]  }
 0x175   :  { %3707 = vmatpush3.bf16.msra.mxu0 %v4062_v36  ;;  %3729 = vmatpush3.bf16.msra.mxu1 %v4063_v37  ;;  %v4093_v36 = vld [vmem:[#allocation4 + $0x4c] ss:$16 sps:$4 sm:$0xff]   ;;  %v4088_v37 = vld [vmem:[#allocation4 + $0x40] ss:$16 sps:$4 sm:$0xff]  }
 0x176   :  { %3708 = vmatprep.subr.bf16.mxu0 %v4064_v38  ;;  %3730 = vmatprep.subr.bf16.mxu1 %v4065_v39  ;;  %v4091_v38 = vld [vmem:[#allocation4 + $0x48] ss:$16 sps:$4 sm:$0xff]   ;;  %v4096_v39 = vld [vmem:[#allocation4 + $0x64] ss:$16 sps:$4 sm:$0xff]  }
 0x179   :  { %3709 = vmatpush3.bf16.msra.mxu0 %v4066_v40  ;;  %3731 = vmatpush3.bf16.msra.mxu1 %v4067_v41  ;;  %v4099_v40 = vld [vmem:[#allocation4 + $0x6c] ss:$16 sps:$4 sm:$0xff]   ;;  %v4094_v41 = vld [vmem:[#allocation4 + $0x60] ss:$16 sps:$4 sm:$0xff]  }
 0x17a   :  { %3710 = vmatprep.subr.bf16.mxu0 %v4068_v42  ;;  %3732 = vmatprep.subr.bf16.mxu1 %v4069_v43  ;;  %v4097_v42 = vld [vmem:[#allocation4 + $0x68] ss:$16 sps:$4 sm:$0xff]   ;;  %v4102_v43 = vld [vmem:[#allocation4 + $0x84] ss:$16 sps:$4 sm:$0xff]  }
 0x17d   :  { %3711 = vmatpush3.bf16.msra.mxu0 %v4070_v44  ;;  %3733 = vmatpush3.bf16.msra.mxu1 %v4071_v45  ;;  %v4100_v44 = vld [vmem:[#allocation4 + $0x80] ss:$16 sps:$4 sm:$0xff]   ;;  %v4103_v45 = vld [vmem:[#allocation4 + $0x88] ss:$16 sps:$4 sm:$0xff]  }
 0x17e   :  { %3712 = vmatprep.subr.bf16.mxu0 %v4072_v4  ;;  %3734 = vmatprep.subr.bf16.mxu1 %v4073_v46  ;;  %v4108_v4 = vld [vmem:[#allocation4 + $0xa4] ss:$16 sps:$4 sm:$0xff]   ;;  %v4111_v46 = vld [vmem:[#allocation4 + $0xac] ss:$16 sps:$4 sm:$0xff]  }
 0x181   :  { %3713 = vmatpush3.bf16.msra.mxu0 %v4074_v47  ;;  %3735 = vmatpush3.bf16.msra.mxu1 %v4075_v49  ;;  %v4106_v47 = vld [vmem:[#allocation4 + $0xa0] ss:$16 sps:$4 sm:$0xff]   ;;  %v4109_v49 = vld [vmem:[#allocation4 + $0xa8] ss:$16 sps:$4 sm:$0xff]  }
 0x182   :  { %2793 = vmatprep.subr.bf16.mxu0 %v4078_v50  ;;  %2879 = vmatprep.subr.bf16.mxu1 %v4081_v51  ;;  %v4114_v50 = vld [vmem:[#allocation4 + $0xc4] ss:$16 sps:$4 sm:$0xff]   ;;  %v4117_v51 = vld [vmem:[#allocation4 + $0xcc] ss:$16 sps:$4 sm:$0xff]  }
 0x237   :  { %v1558_v57 = vpop.f32.mrb[8].mxu0  ;;  %v1644_v58 = vpop.f32.mrb[8].mxu1 }
 0x238   :  { %v3786_v59 = vadd.f32 %v1558_v57, %v824_v53  ;;  %v3790_v60 = vadd.f32 %v1644_v58, %v832_v54  ;;  %v1560_v61 = vpop.f32.mrb[9].mxu0  ;;  %v1646_v63 = vpop.f32.mrb[9].mxu1  ;;  %v4121_v57 = vld [vmem:[#allocation4 + $0xe8] ss:$16 sps:$4 sm:$0xff]   ;;  %v4126_v58 = vld [vmem:[#allocation4 + $0x104] ss:$16 sps:$4 sm:$0xff]  }
 0x239   :  { %v3787_v3 = vadd.f32 %v1560_v61, %v828_v55  ;;  %v3791_v5 = vadd.f32 %v1646_v63, %v836_v56  ;;  %v1562_v6 = vpop.f32.mrb[10].mxu0  ;;  %v1648_v7 = vpop.f32.mrb[10].mxu1  ;;  %v4127_v61 = vld [vmem:[#allocation4 + $0x108] ss:$16 sps:$4 sm:$0xff]   ;;  %v4132_v63 = vld [vmem:[#allocation4 + $0x124] ss:$16 sps:$4 sm:$0xff]  }
 0x23a   :  { %v3788_v8 = vadd.f32 %v1562_v6, %v824_v53  ;;  %v3792_v9 = vadd.f32 %v1648_v7, %v832_v54  ;;  %v1564_v10 = vpop.f32.mrb[11].mxu0  ;;  %v1650_v11 = vpop.f32.mrb[11].mxu1  ;;  %v1653_v15 = vmax.f32 %v3786_v59, 0.0  ;;  %v1655_v17 = vmax.f32 %v3790_v60, 0.0  ;;  %v4115_v53 = vld [vmem:[#allocation4 + $0xc8] ss:$16 sps:$4 sm:$0xff]  }
 0x23b   :  { %v3789_v12 = vadd.f32 %v1564_v10, %v828_v55  ;;  %v3793_v13 = vadd.f32 %v1650_v11, %v836_v56  ;;  %v1654_v20 = vmax.f32 %v3787_v3, 0.0  ;;  %v1656_v21 = vmax.f32 %v3791_v5, 0.0  ;;  %v4120_v54 = vld [vmem:[#allocation4 + $0xe4] ss:$16 sps:$4 sm:$0xff]   ;;  %v4123_v55 = vld [vmem:[#allocation4 + $0xec] ss:$16 sps:$4 sm:$0xff]  }
 0x23c   :  { %v1657_v18 = vmax.f32 %v3788_v8, 0.0  ;;  %v1659_v19 = vmax.f32 %v3792_v9, 0.0  ;;  %v4118_v56 = vld [vmem:[#allocation4 + $0xe0] ss:$16 sps:$4 sm:$0xff]   ;;  %v4129_v59 = vld [vmem:[#allocation4 + $0x10c] ss:$16 sps:$4 sm:$0xff]  }
 0x23d   :  { %v1658_v24 = vmax.f32 %v3789_v12, 0.0  ;;  %v1660_v25 = vmax.f32 %v3793_v13, 0.0  ;;  %v4124_v60 = vld [vmem:[#allocation4 + $0x100] ss:$16 sps:$4 sm:$0xff]   ;;  %v4135_v3 = vld [vmem:[#allocation4 + $0x12c] ss:$16 sps:$4 sm:$0xff]  }
 0x23e   :  { %v1661_v26 = vpack.c.bf16 %v1657_v18, %v1653_v15  ;;  %v1663_v27 = vpack.c.bf16 %v1659_v19, %v1655_v17  ;;  %v4130_v5 = vld [vmem:[#allocation4 + $0x120] ss:$16 sps:$4 sm:$0xff]   ;;  %v4133_v6 = vld [vmem:[#allocation4 + $0x128] ss:$16 sps:$4 sm:$0xff]   ;;  %v4138_v7 = vld [vmem:[#allocation4 + $0x144] ss:$16 sps:$4 sm:$0xff]  }
 0x23f   :  { %v1662_v48 = vpack.c.bf16 %v1658_v24, %v1654_v20  ;;  %v1664_v28 = vpack.c.bf16 %v1660_v25, %v1656_v21  ;;  %v4141_v8 = vld [vmem:[#allocation4 + $0x14c] ss:$16 sps:$4 sm:$0xff]   ;;  %v4136_v9 = vld [vmem:[#allocation4 + $0x140] ss:$16 sps:$4 sm:$0xff]   ;;  %v4139_v10 = vld [vmem:[#allocation4 + $0x148] ss:$16 sps:$4 sm:$0xff]  }
 0x240   :  { %v4144_v11 = vld [vmem:[#allocation4 + $0x164] ss:$16 sps:$4 sm:$0xff]   ;;  %v4147_v12 = vld [vmem:[#allocation4 + $0x16c] ss:$16 sps:$4 sm:$0xff]   ;;  %v4142_v13 = vld [vmem:[#allocation4 + $0x160] ss:$16 sps:$4 sm:$0xff]  }
 0x241   :  { %1953 = vmatprep.mubr.bf16.mxu0 %v1662_v48  ;;  %1994 = vmatprep.mubr.bf16.mxu1 %v1664_v28  ;;  %v4145_v15 = vld [vmem:[#allocation4 + $0x168] ss:$16 sps:$4 sm:$0xff]   ;;  %v4150_v17 = vld [vmem:[#allocation4 + $0x184] ss:$16 sps:$4 sm:$0xff]   ;;  %v4153_v18 = vld [vmem:[#allocation4 + $0x18c] ss:$16 sps:$4 sm:$0xff]  }
 0x242   :  { %1954 = vmatmul.mubr.bf16.vlgmr.msra.gmra.mrb[12].mxu0 %v1661_v26  ;;  %1995 = vmatmul.mubr.bf16.vlgmr.msra.gmra.mrb[12].mxu1 %v1663_v27  ;;  %v4148_v19 = vld [vmem:[#allocation4 + $0x180] ss:$16 sps:$4 sm:$0xff]   ;;  %v4151_v20 = vld [vmem:[#allocation4 + $0x188] ss:$16 sps:$4 sm:$0xff]   ;;  %v4156_v21 = vld [vmem:[#allocation4 + $0x1a4] ss:$16 sps:$4 sm:$0xff]  }
 0x243   :  { %2794 = vmatpush1.bf16.msra.mxu0 %v4076_v29  ;;  %2880 = vmatpush1.bf16.msra.mxu1 %v4079_v30  ;;  %v4159_v24 = vld [vmem:[#allocation4 + $0x1ac] ss:$16 sps:$4 sm:$0xff]   ;;  %v4154_v25 = vld [vmem:[#allocation4 + $0x1a0] ss:$16 sps:$4 sm:$0xff]   ;;  %v4157_v26 = vld [vmem:[#allocation4 + $0x1a8] ss:$16 sps:$4 sm:$0xff]  }
 0x244   :  { %2825 = vmatprep.mubr.bf16.mxu0 %v4551_v16  ;;  %2911 = vmatprep.mubr.bf16.mxu1 %v4551_v16  ;;  %v4105_v16 = vld [vmem:[#allocation4 + $0x8c] ss:$16 sps:$4 sm:$0xff]   ;;  %v4162_v27 = vld [vmem:[#allocation4 + $0x1c4] ss:$16 sps:$4 sm:$0xff]   ;;  %v4160_v28 = vld [vmem:[#allocation4 + $0x1c0] ss:$16 sps:$4 sm:$0xff]  }
 0x245   :  { %2795 = vmatprep.subr.bf16.mxu0 %v4084_v31  ;;  %2881 = vmatprep.subr.bf16.mxu1 %v4087_v32  ;;  %v4165_v48 = vld [vmem:[#allocation4 + $0x1cc] ss:$16 sps:$4 sm:$0xff]   ;;  %v4163_v29 = vld [vmem:[#allocation4 + $0x1c8] ss:$16 sps:$4 sm:$0xff]   ;;  %v4168_v30 = vld [vmem:[#allocation4 + $0x1e4] ss:$16 sps:$4 sm:$0xff]  }
 0x246   :  { %v4171_v31 = vld [vmem:[#allocation4 + $0x1ec] ss:$16 sps:$4 sm:$0xff]   ;;  %v4166_v32 = vld [vmem:[#allocation4 + $0x1e0] ss:$16 sps:$4 sm:$0xff]  }
 0x247   :  { %2796 = vmatpush1.bf16.msra.mxu0 %v4082_v33  ;;  %2882 = vmatpush1.bf16.msra.mxu1 %v4085_v34  ;;  %v4169_v33 = vld [vmem:[#allocation4 + $0x1e8] ss:$16 sps:$4 sm:$0xff]   ;;  %v4174_v34 = vld [vmem:[#allocation4 + $0x204] ss:$16 sps:$4 sm:$0xff]  }
 0x248   :  { %2797 = vmatprep.subr.bf16.mxu0 %v4090_v35  ;;  %2883 = vmatprep.subr.bf16.mxu1 %v4093_v36  ;;  %v4177_v35 = vld [vmem:[#allocation4 + $0x20c] ss:$16 sps:$4 sm:$0xff]   ;;  %v4172_v36 = vld [vmem:[#allocation4 + $0x200] ss:$16 sps:$4 sm:$0xff]  }
 0x24b   :  { %2798 = vmatpush1.bf16.msra.mxu0 %v4088_v37  ;;  %2884 = vmatpush1.bf16.msra.mxu1 %v4091_v38  ;;  %v4175_v37 = vld [vmem:[#allocation4 + $0x208] ss:$16 sps:$4 sm:$0xff]   ;;  %v4180_v38 = vld [vmem:[#allocation4 + $0x224] ss:$16 sps:$4 sm:$0xff]  }
 0x24c   :  { %2799 = vmatprep.subr.bf16.mxu0 %v4096_v39  ;;  %2885 = vmatprep.subr.bf16.mxu1 %v4099_v40  ;;  %v4183_v39 = vld [vmem:[#allocation4 + $0x22c] ss:$16 sps:$4 sm:$0xff]   ;;  %v4178_v40 = vld [vmem:[#allocation4 + $0x220] ss:$16 sps:$4 sm:$0xff]  }
 0x24f   :  { %2800 = vmatpush1.bf16.msra.mxu0 %v4094_v41  ;;  %2886 = vmatpush1.bf16.msra.mxu1 %v4097_v42  ;;  %v4181_v41 = vld [vmem:[#allocation4 + $0x228] ss:$16 sps:$4 sm:$0xff]   ;;  %v4186_v42 = vld [vmem:[#allocation4 + $0x244] ss:$16 sps:$4 sm:$0xff]  }
 0x250   :  { %2801 = vmatprep.subr.bf16.mxu0 %v4102_v43  ;;  %2887 = vmatprep.subr.bf16.mxu1 %v4105_v16  ;;  %v4189_v43 = vld [vmem:[#allocation4 + $0x24c] ss:$16 sps:$4 sm:$0xff]   ;;  %v4184_v16 = vld [vmem:[#allocation4 + $0x240] ss:$16 sps:$4 sm:$0xff]  }
 0x253   :  { %2802 = vmatpush1.bf16.msra.mxu0 %v4100_v44  ;;  %2888 = vmatpush1.bf16.msra.mxu1 %v4103_v45  ;;  %v4187_v44 = vld [vmem:[#allocation4 + $0x248] ss:$16 sps:$4 sm:$0xff]   ;;  %v4192_v45 = vld [vmem:[#allocation4 + $0x264] ss:$16 sps:$4 sm:$0xff]  }
 0x254   :  { %2803 = vmatprep.subr.bf16.mxu0 %v4108_v4  ;;  %2889 = vmatprep.subr.bf16.mxu1 %v4111_v46  ;;  %v4190_v4 = vld [vmem:[#allocation4 + $0x260] ss:$16 sps:$4 sm:$0xff]   ;;  %v4193_v46 = vld [vmem:[#allocation4 + $0x268] ss:$16 sps:$4 sm:$0xff]  }
 0x257   :  { %2804 = vmatpush1.bf16.msra.mxu0 %v4106_v47  ;;  %2890 = vmatpush1.bf16.msra.mxu1 %v4109_v49  ;;  %v4198_v47 = vld [vmem:[#allocation4 + $0x284] ss:$16 sps:$4 sm:$0xff]   ;;  %v4196_v49 = vld [vmem:[#allocation4 + $0x280] ss:$16 sps:$4 sm:$0xff]  }
 0x258   :  { %2805 = vmatprep.subr.bf16.mxu0 %v4114_v50  ;;  %2891 = vmatprep.subr.bf16.mxu1 %v4117_v51  ;;  %v4199_v50 = vld [vmem:[#allocation4 + $0x288] ss:$16 sps:$4 sm:$0xff]   ;;  %v4204_v51 = vld [vmem:[#allocation4 + $0x2a4] ss:$16 sps:$4 sm:$0xff]  }
 0x25b   :  { %2806 = vmatpush1.bf16.msra.mxu0 %v4112_v52  ;;  %2892 = vmatpush1.bf16.msra.mxu1 %v4115_v53  ;;  %v4207_v52 = vld [vmem:[#allocation4 + $0x2ac] ss:$16 sps:$4 sm:$0xff]   ;;  %v4202_v53 = vld [vmem:[#allocation4 + $0x2a0] ss:$16 sps:$4 sm:$0xff]  }
 0x25c   :  { %2807 = vmatprep.subr.bf16.mxu0 %v4120_v54  ;;  %2893 = vmatprep.subr.bf16.mxu1 %v4123_v55  ;;  %v4205_v54 = vld [vmem:[#allocation4 + $0x2a8] ss:$16 sps:$4 sm:$0xff]   ;;  %v4210_v55 = vld [vmem:[#allocation4 + $0x2c4] ss:$16 sps:$4 sm:$0xff]  }
 0x25f   :  { %2808 = vmatpush1.bf16.msra.mxu0 %v4118_v56  ;;  %2894 = vmatpush1.bf16.msra.mxu1 %v4121_v57  ;;  %v4213_v56 = vld [vmem:[#allocation4 + $0x2cc] ss:$16 sps:$4 sm:$0xff]   ;;  %v4208_v57 = vld [vmem:[#allocation4 + $0x2c0] ss:$16 sps:$4 sm:$0xff]  }
 0x260   :  { %2809 = vmatprep.subr.bf16.mxu0 %v4126_v58  ;;  %2895 = vmatprep.subr.bf16.mxu1 %v4129_v59  ;;  %v4211_v58 = vld [vmem:[#allocation4 + $0x2c8] ss:$16 sps:$4 sm:$0xff]   ;;  %v4216_v59 = vld [vmem:[#allocation4 + $0x2e4] ss:$16 sps:$4 sm:$0xff]  }
 0x263   :  { %2810 = vmatpush1.bf16.msra.mxu0 %v4124_v60  ;;  %2896 = vmatpush1.bf16.msra.mxu1 %v4127_v61  ;;  %v4219_v60 = vld [vmem:[#allocation4 + $0x2ec] ss:$16 sps:$4 sm:$0xff]   ;;  %v4214_v61 = vld [vmem:[#allocation4 + $0x2e0] ss:$16 sps:$4 sm:$0xff]  }
 0x264   :  { %2811 = vmatprep.subr.bf16.mxu0 %v4132_v63  ;;  %2897 = vmatprep.subr.bf16.mxu1 %v4135_v3  ;;  %v4217_v63 = vld [vmem:[#allocation4 + $0x2e8] ss:$16 sps:$4 sm:$0xff]   ;;  %v4222_v3 = vld [vmem:[#allocation4 + $0x304] ss:$16 sps:$4 sm:$0xff]  }
 0x267   :  { %2812 = vmatpush1.bf16.msra.mxu0 %v4130_v5  ;;  %2898 = vmatpush1.bf16.msra.mxu1 %v4133_v6  ;;  %v4225_v5 = vld [vmem:[#allocation4 + $0x30c] ss:$16 sps:$4 sm:$0xff]   ;;  %v4220_v6 = vld [vmem:[#allocation4 + $0x300] ss:$16 sps:$4 sm:$0xff]  }
 0x268   :  { %2813 = vmatprep.subr.bf16.mxu0 %v4138_v7  ;;  %2899 = vmatprep.subr.bf16.mxu1 %v4141_v8  ;;  %v4223_v7 = vld [vmem:[#allocation4 + $0x308] ss:$16 sps:$4 sm:$0xff]   ;;  %v4228_v8 = vld [vmem:[#allocation4 + $0x324] ss:$16 sps:$4 sm:$0xff]  }
 0x26b   :  { %2814 = vmatpush1.bf16.msra.mxu0 %v4136_v9  ;;  %2900 = vmatpush1.bf16.msra.mxu1 %v4139_v10  ;;  %v4231_v9 = vld [vmem:[#allocation4 + $0x32c] ss:$16 sps:$4 sm:$0xff]   ;;  %v4226_v10 = vld [vmem:[#allocation4 + $0x320] ss:$16 sps:$4 sm:$0xff]  }
 0x26c   :  { %2815 = vmatprep.subr.bf16.mxu0 %v4144_v11  ;;  %2901 = vmatprep.subr.bf16.mxu1 %v4147_v12  ;;  %v4229_v11 = vld [vmem:[#allocation4 + $0x328] ss:$16 sps:$4 sm:$0xff]   ;;  %v4234_v12 = vld [vmem:[#allocation4 + $0x344] ss:$16 sps:$4 sm:$0xff]  }
 0x26f   :  { %2816 = vmatpush1.bf16.msra.mxu0 %v4142_v13  ;;  %2902 = vmatpush1.bf16.msra.mxu1 %v4145_v15  ;;  %v4237_v13 = vld [vmem:[#allocation4 + $0x34c] ss:$16 sps:$4 sm:$0xff]   ;;  %v4232_v15 = vld [vmem:[#allocation4 + $0x340] ss:$16 sps:$4 sm:$0xff]  }
 0x270   :  { %2817 = vmatprep.subr.bf16.mxu0 %v4150_v17  ;;  %2903 = vmatprep.subr.bf16.mxu1 %v4153_v18  ;;  %v4235_v17 = vld [vmem:[#allocation4 + $0x348] ss:$16 sps:$4 sm:$0xff]   ;;  %v4240_v18 = vld [vmem:[#allocation4 + $0x364] ss:$16 sps:$4 sm:$0xff]  }
 0x273   :  { %2818 = vmatpush1.bf16.msra.mxu0 %v4148_v19  ;;  %2904 = vmatpush1.bf16.msra.mxu1 %v4151_v20  ;;  %v4243_v19 = vld [vmem:[#allocation4 + $0x36c] ss:$16 sps:$4 sm:$0xff]   ;;  %v4238_v20 = vld [vmem:[#allocation4 + $0x360] ss:$16 sps:$4 sm:$0xff]  }
 0x274   :  { %2819 = vmatprep.subr.bf16.mxu0 %v4156_v21  ;;  %2905 = vmatprep.subr.bf16.mxu1 %v4159_v24  ;;  %v4241_v21 = vld [vmem:[#allocation4 + $0x368] ss:$16 sps:$4 sm:$0xff]   ;;  %v4246_v24 = vld [vmem:[#allocation4 + $0x384] ss:$16 sps:$4 sm:$0xff]  }
 0x277   :  { %2820 = vmatpush1.bf16.msra.mxu0 %v4154_v25  ;;  %2906 = vmatpush1.bf16.msra.mxu1 %v4157_v26  ;;  %v4249_v25 = vld [vmem:[#allocation4 + $0x38c] ss:$16 sps:$4 sm:$0xff]   ;;  %v4244_v26 = vld [vmem:[#allocation4 + $0x380] ss:$16 sps:$4 sm:$0xff]  }
 0x278   :  { %2821 = vmatprep.subr.bf16.mxu0 %v4162_v27  ;;  %2907 = vmatprep.subr.bf16.mxu1 %v4165_v48  ;;  %v4247_v27 = vld [vmem:[#allocation4 + $0x388] ss:$16 sps:$4 sm:$0xff]   ;;  %v4252_v48 = vld [vmem:[#allocation4 + $0x3a4] ss:$16 sps:$4 sm:$0xff]  }
 0x27b   :  { %2822 = vmatpush1.bf16.msra.mxu0 %v4160_v28  ;;  %2908 = vmatpush1.bf16.msra.mxu1 %v4163_v29  ;;  %v4255_v28 = vld [vmem:[#allocation4 + $0x3ac] ss:$16 sps:$4 sm:$0xff]   ;;  %v4250_v29 = vld [vmem:[#allocation4 + $0x3a0] ss:$16 sps:$4 sm:$0xff]  }
 0x27c   :  { %2823 = vmatprep.subr.bf16.mxu0 %v4168_v30  ;;  %2909 = vmatprep.subr.bf16.mxu1 %v4171_v31  ;;  %v4253_v30 = vld [vmem:[#allocation4 + $0x3a8] ss:$16 sps:$4 sm:$0xff]   ;;  %v4258_v31 = vld [vmem:[#allocation4 + $0x3c4] ss:$16 sps:$4 sm:$0xff]  }
 0x27f   :  { %2824 = vmatpush1.bf16.msra.mxu0 %v4166_v32  ;;  %2910 = vmatpush1.bf16.msra.mxu1 %v4169_v33  ;;  %v4261_v32 = vld [vmem:[#allocation4 + $0x3cc] ss:$16 sps:$4 sm:$0xff]   ;;  %v4256_v33 = vld [vmem:[#allocation4 + $0x3c0] ss:$16 sps:$4 sm:$0xff]  }
 0x280   :  { %2836 = vmatprep.subr.bf16.mxu0 %v4174_v34  ;;  %2922 = vmatprep.subr.bf16.mxu1 %v4177_v35  ;;  %v4259_v34 = vld [vmem:[#allocation4 + $0x3c8] ss:$16 sps:$4 sm:$0xff]   ;;  %v4264_v35 = vld [vmem:[#allocation4 + $0x3e4] ss:$16 sps:$4 sm:$0xff]  }
 0x282   :  { %2826 = vmatmul.mubr.bf16.vlgmr.msra.gmra.mrb[16].mxu0 %v4549_v14  ;;  %2912 = vmatmul.mubr.bf16.vlgmr.msra.gmra.mrb[16].mxu1 %v4549_v14  ;;  %v4195_v14 = vld [vmem:[#allocation4 + $0x26c] ss:$16 sps:$4 sm:$0xff]  }
 0x283   :  { %2837 = vmatpush1.bf16.msra.mxu0 %v4172_v36  ;;  %2868 = vmatprep.mubr.bf16.mxu0 %v4555_v23  ;;  %v4267_v36 = vld [vmem:[#allocation4 + $0x3ec] ss:$16 sps:$4 sm:$0xff]  }
 0x284   :  { %2923 = vmatpush1.bf16.msra.mxu1 %v4175_v37  ;;  %2954 = vmatprep.mubr.bf16.mxu1 %v4555_v23  ;;  %v4201_v23 = vld [vmem:[#allocation4 + $0x28c] ss:$16 sps:$4 sm:$0xff]   ;;  %v4262_v37 = vld [vmem:[#allocation4 + $0x3e0] ss:$16 sps:$4 sm:$0xff]  }
 0x285   :  { %2838 = vmatprep.subr.bf16.mxu0 %v4180_v38  ;;  %2924 = vmatprep.subr.bf16.mxu1 %v4183_v39  ;;  %v4265_v38 = vld [vmem:[#allocation4 + $0x3e8] ss:$16 sps:$4 sm:$0xff]   ;;  %v4268_v39 = vld [vmem:[%s4800_s10 + $0x40] sm:$0xff]  }
 0x287   :  { %2839 = vmatpush1.bf16.msra.mxu0 %v4178_v40  ;;  %v4269_v40 = vld [vmem:[%s4800_s10 + $0xc0] sm:$0xff]  }
 0x288   :  { %2925 = vmatpush1.bf16.msra.mxu1 %v4181_v41  ;;  %2840 = vmatprep.subr.bf16.mxu0 %v4186_v42  ;;  %v4270_v41 = vld [vmem:[%s4800_s10] sm:$0xff]  }
 0x289   :  { %2926 = vmatprep.subr.bf16.mxu1 %v4189_v43  ;;  %v4271_v42 = vld [vmem:[%s4800_s10 + $0x80] sm:$0xff]   ;;  %v4272_v43 = vld [vmem:[%s4800_s10 + $0x48] sm:$0xff]  }
 0x28b   :  { %2841 = vmatpush1.bf16.msra.mxu0 %v4184_v16  ;;  %v4273_v16 = vld [vmem:[%s4800_s10 + $0xc8] sm:$0xff]  }
 0x28c   :  { %2927 = vmatpush1.bf16.msra.mxu1 %v4187_v44  ;;  %2842 = vmatprep.subr.bf16.mxu0 %v4192_v45  ;;  %v4274_v44 = vld [vmem:[%s4800_s10 + $0x8] sm:$0xff]  }
 0x28d   :  { %2928 = vmatprep.subr.bf16.mxu1 %v4195_v14  ;;  %v4275_v45 = vld [vmem:[%s4800_s10 + $0x88] sm:$0xff]   ;;  %v4276_v14 = vld [vmem:[%s4800_s10 + $0x50] sm:$0xff]  }
 0x28f   :  { %2843 = vmatpush1.bf16.msra.mxu0 %v4190_v4  ;;  %v4278_v4 = vld [vmem:[%s4800_s10 + $0x10] sm:$0xff]  }
 0x290   :  { %2929 = vmatpush1.bf16.msra.mxu1 %v4193_v46  ;;  %2844 = vmatprep.subr.bf16.mxu0 %v4198_v47  ;;  %v4279_v46 = vld [vmem:[%s4800_s10 + $0x90] sm:$0xff]   ;;  %v4280_v47 = vld [vmem:[%s4800_s10 + $0x58] sm:$0xff]  }
 0x291   :  { %2930 = vmatprep.subr.bf16.mxu1 %v4201_v23  ;;  %v4281_v23 = vld [vmem:[%s4800_s10 + $0xd8] sm:$0xff]  }
 0x293   :  { %2845 = vmatpush1.bf16.msra.mxu0 %v4196_v49  ;;  %v4282_v49 = vld [vmem:[%s4800_s10 + $0x18] sm:$0xff]  }
 0x294   :  { %2931 = vmatpush1.bf16.msra.mxu1 %v4199_v50  ;;  %2846 = vmatprep.subr.bf16.mxu0 %v4204_v51  ;;  %v4283_v50 = vld [vmem:[%s4800_s10 + $0x98] sm:$0xff]   ;;  %v4284_v51 = vld [vmem:[%s4800_s10 + $0x60] sm:$0xff]  }
 0x295   :  { %2932 = vmatprep.subr.bf16.mxu1 %v4207_v52  ;;  %v4285_v52 = vld [vmem:[%s4800_s10 + $0xe0] sm:$0xff]  }
 0x297   :  { %2847 = vmatpush1.bf16.msra.mxu0 %v4202_v53  ;;  %v4286_v53 = vld [vmem:[%s4800_s10 + $0x20] sm:$0xff]  }
 0x298   :  { %2933 = vmatpush1.bf16.msra.mxu1 %v4205_v54  ;;  %2848 = vmatprep.subr.bf16.mxu0 %v4210_v55  ;;  %v4287_v54 = vld [vmem:[%s4800_s10 + $0xa0] sm:$0xff]   ;;  %v4288_v55 = vld [vmem:[%s4800_s10 + $0x68] sm:$0xff]  }
 0x299   :  { %2934 = vmatprep.subr.bf16.mxu1 %v4213_v56  ;;  %v4289_v56 = vld [vmem:[%s4800_s10 + $0xe8] sm:$0xff]  }
 0x29b   :  { %2849 = vmatpush1.bf16.msra.mxu0 %v4208_v57  ;;  %v4290_v57 = vld [vmem:[%s4800_s10 + $0x28] sm:$0xff]  }
 0x29c   :  { %2935 = vmatpush1.bf16.msra.mxu1 %v4211_v58  ;;  %2850 = vmatprep.subr.bf16.mxu0 %v4216_v59  ;;  %v4291_v58 = vld [vmem:[%s4800_s10 + $0xa8] sm:$0xff]  }
 0x29d   :  { %2936 = vmatprep.subr.bf16.mxu1 %v4219_v60 }
 0x29f   :  { %2851 = vmatpush1.bf16.msra.mxu0 %v4214_v61 }
 0x2a0   :  { %2937 = vmatpush1.bf16.msra.mxu1 %v4217_v63  ;;  %2852 = vmatprep.subr.bf16.mxu0 %v4222_v3 }
 0x2a1   :  { %2938 = vmatprep.subr.bf16.mxu1 %v4225_v5 }
 0x2a3   :  { %2853 = vmatpush1.bf16.msra.mxu0 %v4220_v6 }
 0x2a4   :  { %2939 = vmatpush1.bf16.msra.mxu1 %v4223_v7  ;;  %2854 = vmatprep.subr.bf16.mxu0 %v4228_v8  ;;  %v4292_v8 = vld [vmem:[%s4800_s10 + $0x70] sm:$0xff]  }
 0x2a5   :  { %2940 = vmatprep.subr.bf16.mxu1 %v4231_v9  ;;  %v4293_v9 = vld [vmem:[%s4800_s10 + $0xf0] sm:$0xff]  }
 0x2a7   :  { %2855 = vmatpush1.bf16.msra.mxu0 %v4226_v10 }
 0x2a8   :  { %2941 = vmatpush1.bf16.msra.mxu1 %v4229_v11  ;;  %2856 = vmatprep.subr.bf16.mxu0 %v4234_v12  ;;  %v4294_v12 = vld [vmem:[%s4800_s10 + $0x30] sm:$0xff]  }
 0x2a9   :  { %2942 = vmatprep.subr.bf16.mxu1 %v4237_v13  ;;  %v4295_v13 = vld [vmem:[%s4800_s10 + $0xb0] sm:$0xff]  }
 0x2ab   :  { %2857 = vmatpush1.bf16.msra.mxu0 %v4232_v15 }
 0x2ac   :  { %2943 = vmatpush1.bf16.msra.mxu1 %v4235_v17  ;;  %2858 = vmatprep.subr.bf16.mxu0 %v4240_v18 }
 0x2ad   :  { %2944 = vmatprep.subr.bf16.mxu1 %v4243_v19 }
 0x2af   :  { %2859 = vmatpush1.bf16.msra.mxu0 %v4238_v20  ;;  %v4296_v20 = vld [vmem:[%s4800_s10 + $0x78] sm:$0xff]  }
 0x2b0   :  { %2945 = vmatpush1.bf16.msra.mxu1 %v4241_v21  ;;  %2860 = vmatprep.subr.bf16.mxu0 %v4246_v24  ;;  %v4297_v21 = vld [vmem:[%s4800_s10 + $0xf8] sm:$0xff]  }
 0x2b1   :  { %2946 = vmatprep.subr.bf16.mxu1 %v4249_v25  ;;  %v4298_v24 = vld [vmem:[%s4800_s10 + $0x38] sm:$0xff]  }
 0x2b2   :  { %v4299_v25 = vld [vmem:[%s4800_s10 + $0xb8] sm:$0xff]  }
 0x2b3   :  { %2861 = vmatpush1.bf16.msra.mxu0 %v4244_v26  ;;  %v2131_v26 = vld [vmem:[%s4798_s8] sm:$0xf]  ;;  %s4354_s8 = smov 1  }
 0x2b4   :  { %2947 = vmatpush1.bf16.msra.mxu1 %v4247_v27  ;;  %2862 = vmatprep.subr.bf16.mxu0 %v4252_v48  ;;  %v2136_v27 = vrot.slane %v2131_v26, %v4525_v62  ;;  %v2144_v48 = vrot.slane %v2131_v26, %v4534_v1 }
 0x2b5   :  { %2948 = vmatprep.subr.bf16.mxu1 %v4255_v28  ;;  %v2140_v28 = vrot.slane %v2131_v26, %v4531_v0 }
 0x2b7   :  { %2863 = vmatpush1.bf16.msra.mxu0 %v4250_v29  ;;  %v2148_v29 = vrot.slane %v2131_v26, %v4537_v2 }
 0x2b8   :  { %2949 = vmatpush1.bf16.msra.mxu1 %v4253_v30  ;;  %2864 = vmatprep.subr.bf16.mxu0 %v4258_v31 }
 0x2b9   :  { %2950 = vmatprep.subr.bf16.mxu1 %v4261_v32 }
 0x2bb   :  { %2865 = vmatpush1.bf16.msra.mxu0 %v4256_v33 }
 0x2bc   :  { %2951 = vmatpush1.bf16.msra.mxu1 %v4259_v34  ;;  %2866 = vmatprep.subr.bf16.mxu0 %v4264_v35 }
 0x2bd   :  { %2952 = vmatprep.subr.bf16.mxu1 %v4267_v36 }
 0x2bf   :  { %2867 = vmatpush1.bf16.msra.mxu0 %v4262_v37 }
 0x2c0   :  { %2953 = vmatpush1.bf16.msra.mxu1 %v4265_v38  ;;  %3742 = vmatprep.subr.bf16.mxu0 %v4268_v39 }
 0x2c1   :  { %3764 = vmatprep.subr.bf16.mxu1 %v4269_v40 }
 0x2c2   :  { %2869 = vmatmul.mubr.bf16.vlgmr.msra.gmra.mrb[16].mxu0 %v4553_v22 }
 0x2c3   :  { %2955 = vmatmul.mubr.bf16.vlgmr.msra.gmra.mrb[16].mxu1 %v4553_v22  ;;  %3743 = vmatpush3.bf16.msra.mxu0 %v4270_v41  ;;  %v4277_v22 = vld [vmem:[%s4800_s10 + $0xd0] sm:$0xff]  }
 0x2c4   :  { %3765 = vmatpush3.bf16.msra.mxu1 %v4271_v42  ;;  %3744 = vmatprep.subr.bf16.mxu0 %v4272_v43 }
 0x2c5   :  { %3766 = vmatprep.subr.bf16.mxu1 %v4273_v16 }
 0x2c7   :  { %3745 = vmatpush3.bf16.msra.mxu0 %v4274_v44 }
 0x2c8   :  { %3767 = vmatpush3.bf16.msra.mxu1 %v4275_v45  ;;  %3746 = vmatprep.subr.bf16.mxu0 %v4276_v14 }
 0x2c9   :  { %3768 = vmatprep.subr.bf16.mxu1 %v4277_v22 }
 0x2cb   :  { %3747 = vmatpush3.bf16.msra.mxu0 %v4278_v4 }
 0x2cc   :  { %3769 = vmatpush3.bf16.msra.mxu1 %v4279_v46  ;;  %3748 = vmatprep.subr.bf16.mxu0 %v4280_v47 }
 0x2cd   :  { %3770 = vmatprep.subr.bf16.mxu1 %v4281_v23 }
 0x2cf   :  { %3749 = vmatpush3.bf16.msra.mxu0 %v4282_v49 }
 0x2d0   :  { %3771 = vmatpush3.bf16.msra.mxu1 %v4283_v50  ;;  %3750 = vmatprep.subr.bf16.mxu0 %v4284_v51 }
 0x2d1   :  { %3772 = vmatprep.subr.bf16.mxu1 %v4285_v52 }
 0x2d3   :  { %3751 = vmatpush3.bf16.msra.mxu0 %v4286_v53 }
 0x2d4   :  { %3773 = vmatpush3.bf16.msra.mxu1 %v4287_v54  ;;  %3752 = vmatprep.subr.bf16.mxu0 %v4288_v55 }
 0x2d5   :  { %3774 = vmatprep.subr.bf16.mxu1 %v4289_v56 }
 0x2d7   :  { %3753 = vmatpush3.bf16.msra.mxu0 %v4290_v57 }
 0x2d8   :  { %3775 = vmatpush3.bf16.msra.mxu1 %v4291_v58  ;;  %3754 = vmatprep.subr.bf16.mxu0 %v4292_v8 }
 0x2d9   :  { %3776 = vmatprep.subr.bf16.mxu1 %v4293_v9 }
 0x2db   :  { %3755 = vmatpush3.bf16.msra.mxu0 %v4294_v12 }
 0x2dc   :  { %3777 = vmatpush3.bf16.msra.mxu1 %v4295_v13  ;;  %3756 = vmatprep.subr.bf16.mxu0 %v4296_v20 }
 0x2dd   :  { %3778 = vmatprep.subr.bf16.mxu1 %v4297_v21 }
 0x2df   :  { %3757 = vmatpush3.bf16.msra.mxu0 %v4298_v24 }
 0x2e0   :  { %3779 = vmatpush3.bf16.msra.mxu1 %v4299_v25 }
 0x315   :  { %v3714_v59 = vpop.f32.mrb[12].mxu0  ;;  %v3736_v60 = vpop.f32.mrb[12].mxu1 }
 0x316   :  { %v3715_v61 = vpop.f32.mrb[13].mxu0  ;;  %v3737_v63 = vpop.f32.mrb[13].mxu1 }
 0x317   :  { %v3716_v3 = vadd.f32 %v3715_v61, %v3714_v59  ;;  %v3738_v5 = vadd.f32 %v3737_v63, %v3736_v60  ;;  %v3717_v6 = vpop.f32.mrb[14].mxu0  ;;  %v3739_v7 = vpop.f32.mrb[14].mxu1 }
 0x318   :  { %v3718_v10 = vpop.f32.mrb[15].mxu0  ;;  %v3740_v11 = vpop.f32.mrb[15].mxu1 }
 0x319   :  { %v4754_v15 = vadd.f32 %v3738_v5, %v3716_v3  ;;  %v3719_v17 = vadd.f32 %v3718_v10, %v3717_v6  ;;  %v3741_v18 = vadd.f32 %v3740_v11, %v3739_v7  ;;  %v3697_v5 = vld [vmem:[%s4801_s11] ss:$0 sm:$0xff] }
 0x31b   :  { %v4756_v19 = vadd.f32 %v3741_v18, %v3719_v17 }
 0x395   :  { %v2870_v30 = vpop.f32.mrb[16].mxu0 }
 0x396   :  { %v3794_v31 = vadd.f32 %v2870_v30, %v2136_v27  ;;  %v2956_v32 = vpop.f32.mrb[16].mxu1  ;;  %v2872_v33 = vpop.f32.mrb[17].mxu0 }
 0x397   :  { %v3798_v34 = vadd.f32 %v2956_v32, %v2144_v48  ;;  %v3795_v35 = vadd.f32 %v2872_v33, %v2140_v28  ;;  %v2958_v36 = vpop.f32.mrb[17].mxu1  ;;  %v2874_v37 = vpop.f32.mrb[18].mxu0 }
 0x398   :  { %v3799_v38 = vadd.f32 %v2958_v36, %v2148_v29  ;;  %v3796_v39 = vadd.f32 %v2874_v37, %v2136_v27  ;;  %v2960_v40 = vpop.f32.mrb[18].mxu1  ;;  %v2876_v41 = vpop.f32.mrb[19].mxu0  ;;  %v2965_v1 = vmax.f32 %v3794_v31, 0.0 }
 0x399   :  { %v3800_v42 = vadd.f32 %v2960_v40, %v2144_v48  ;;  %v3797_v62 = vadd.f32 %v2876_v41, %v2140_v28  ;;  %v2962_v43 = vpop.f32.mrb[19].mxu1  ;;  %v2967_v44 = vmax.f32 %v3798_v34, 0.0  ;;  %v2966_v2 = vmax.f32 %v3795_v35, 0.0 }
 0x39a   :  { %v2969_v16 = vmax.f32 %v3796_v39, 0.0  ;;  %v3801_v0 = vadd.f32 %v2962_v43, %v2148_v29  ;;  %v2968_v22 = vmax.f32 %v3799_v38, 0.0 }
 0x39b   :  { %v2971_v45 = vmax.f32 %v3800_v42, 0.0  ;;  %v2970_v14 = vmax.f32 %v3797_v62, 0.0 }
 0x39c   :  { %v2973_v4 = vpack.c.bf16 %v2969_v16, %v2965_v1  ;;  %v2972_v46 = vmax.f32 %v3801_v0, 0.0 }
 0x39d   :  { %v2975_v47 = vpack.c.bf16 %v2971_v45, %v2967_v44  ;;  %v2974_v23 = vpack.c.bf16 %v2970_v14, %v2966_v2 }
 0x39e   :  { %v2976_v49 = vpack.c.bf16 %v2972_v46, %v2968_v22 }
 0x39f   :  { %3265 = vmatprep.mubr.bf16.mxu0 %v2974_v23 }
 0x3a0   :  { %3306 = vmatprep.mubr.bf16.mxu1 %v2976_v49  ;;  %3266 = vmatmul.mubr.bf16.vlgmr.msra.gmra.mrb[20].mxu0 %v2973_v4 }
 0x3a1   :  { %3307 = vmatmul.mubr.bf16.vlgmr.msra.gmra.mrb[20].mxu1 %v2975_v47 }
 0x473   :  { %v3758_v50 = vpop.f32.mrb[20].mxu0 }
 0x474   :  { %v3780_v51 = vpop.f32.mrb[20].mxu1  ;;  %v3759_v52 = vpop.f32.mrb[21].mxu0 }
 0x475   :  { %v3760_v53 = vadd.f32 %v3759_v52, %v3758_v50  ;;  %v3781_v54 = vpop.f32.mrb[21].mxu1  ;;  %v3761_v55 = vpop.f32.mrb[22].mxu0 }
 0x476   :  { %v3782_v56 = vadd.f32 %v3781_v54, %v3780_v51  ;;  %v3783_v57 = vpop.f32.mrb[22].mxu1  ;;  %v3762_v58 = vpop.f32.mrb[23].mxu0 }
 0x477   :  { %v3763_v59 = vadd.f32 %v3762_v58, %v3761_v55  ;;  %v3784_v60 = vpop.f32.mrb[23].mxu1 }
 0x478   :  { %v3785_v61 = vadd.f32 %v3784_v60, %v3783_v57  ;;  %v3309_v63 = vadd.f32 %v3782_v56, %v3760_v53 }
 0x47a   :  { %v3312_v3 = vadd.f32 %v3785_v61, %v3763_v59  ;;  %3317 = vrot.lane.b32.xlu0 %v3309_v63, %s4354_s8 }
 0x47e   :  { %3319 = vrot.lane.b32.xlu0 %v3312_v3, %s4354_s8 }
 0x4ec   :  { %v3318_v6 = vpop.permute.xlu0 %3317 }
 0x4ed   :  { %v3324_v7 = vsel %vm3323_vm4, %v4754_v15, %v3318_v6 }
 0x4ee   :  { %v3333_v8 = vadd.f32 %v3697_v5, %v3324_v7 }
 0x4f0   :  { %3335 = vst.msk [vmem:[%s4802_s12] sm:$0xff] %vm142_vm1, %v3333_v8  ;;  %v3320_v9 = vpop.permute.xlu0 %3319 }
 0x4f1   :  { %v3325_v10 = vsel %vm3323_vm4, %v4756_v19, %v3320_v9 }
 0x4f2   :  { %v3334_v11 = vadd.f32 %v3697_v5, %v3325_v10 }
 0x4f4   :  { %3336 = vst.msk [vmem:[%s4802_s12 + $0x8] sm:$0xff] %vm142_vm1, %v3334_v11 }
 0x4f5   :  { %3341 = vsyncpa [#allocation3], 1 }
 0x4f6   :  { %3342 = vsyncpa [#allocation5], 1 }

</bundles_post_ra>
